<compile_context>
chip_gen: v7x
topology: tpu7x:2x2x1
jax: 0.10.0
libtpu: 0.0.40
codegen_flags: <defaults>
</compile_context>

<pallas_src>
import functools

import jax
import jax.numpy as jnp
from jax.experimental import pallas as pl
from jax.experimental.pallas import tpu as pltpu

_K = 4          # conv kernel size (fixed by the module)
_LANE = 128     # TPU lane width
_SUBLANE = 8    # TPU sublane width


def _round_up(x, m):
    return ((x + m - 1) // m) * m


# --------------------- generation-dependent VMEM limit ------------------------
@functools.lru_cache(maxsize=None)
def _vmem_limit_bytes():
    # ~96 MiB on 128-MiB parts (v5e/v6e), 48 MiB on v7x (64 MiB physical).
    try:
        cap = pltpu.get_tpu_info().vmem_capacity_bytes
    except Exception:
        cap = 64 * 1024 * 1024
    return min(int(cap * 3 // 4), 100 * 1024 * 1024)


# ------------------- single-buffered resident weight specs --------------------
_SINGLE_BUF_WEIGHTS = [True]   # flipped off once if pl.Buffered(1) is unsupported


def _weight_spec(block_shape, index_map, single_buf):
    # Constant index_map -> block stays resident across grid steps; the second
    # pipeline buffer is pure VMEM waste, so request single buffering.
    if single_buf:
        return pl.BlockSpec(block_shape, index_map, pipeline_mode=pl.Buffered(1))
    return pl.BlockSpec(block_shape, index_map)


def _run_layer(build_and_call):
    """Run one layer; retry with default buffering if Buffered(1) is rejected."""
    if _SINGLE_BUF_WEIGHTS[0]:
        try:
            return build_and_call(True)
        except Exception:
            _SINGLE_BUF_WEIGHTS[0] = False
    return build_and_call(False)


# ------------------------------ Pallas kernels ---------------------------------
def _im2col_gemm_kernel(p_ref, w_ref, b_ref, o_ref):
    # p_ref: (row_tile, KKC_p) bf16   im2col patches
    # w_ref: (KKC_p, Cout_p)   bf16
    # b_ref: (1, Cout_p)       f32
    # o_ref: (row_tile, Cout_p) bf16
    y = jnp.dot(p_ref[...], w_ref[...],
                preferred_element_type=jnp.float32) + b_ref[...]
    y = jnp.where(y > 0, y, 0.2 * y)                       # LeakyReLU(0.2)
    o_ref[...] = y.astype(o_ref.dtype)


def _tap_conv_kernel(planes_ref, w_ref, b_ref, o_ref, *,
                     taps, prows, w_full, wo, n_valid,
                     use_in_norm, use_lrelu):
    # planes_ref: (n_planes, Lp, Cin_p)  bf16  flattened shifted source planes
    # w_ref:      (16, Cin_p, Cout_p)    bf16  one (Cin_p, Cout_p) slab per tap
    # b_ref:      (1, Cout_p)            f32
    # o_ref:      (prows, Cout_p)        bf16 (intermediate) / f32 (final)
    plane0, off0 = taps[0]
    # Accumulator initialized from tap 0's dot + bias (no zeros / extra add).
    acc = jnp.dot(planes_ref[plane0, pl.ds(off0, prows), :], w_ref[0],
                  preferred_element_type=jnp.float32) + b_ref[...]
    for t in range(1, len(taps)):
        plane, off = taps[t]
        acc = acc + jnp.dot(planes_ref[plane, pl.ds(off, prows), :], w_ref[t],
                            preferred_element_type=jnp.float32)
    y = acc

    if use_in_norm:
        # InstanceNorm2d defaults: biased variance over spatial, eps=1e-5,
        # affine=False.  Garbage overlap columns (flattened index q with
        # q % w_full >= wo) are masked out of the statistics.  Single traversal
        # (sum + sum-of-squares, f32).
        q = jax.lax.broadcasted_iota(jnp.int32, (prows, 1), 0)
        mask = ((q % w_full) < wo).astype(jnp.float32)      # (prows, 1)
        inv_n = 1.0 / float(n_valid)
        ym = y * mask
        s1 = jnp.sum(ym, axis=0, keepdims=True)
        s2 = jnp.sum(ym * y, axis=0, keepdims=True)
        mean = s1 * inv_n
        var = jnp.maximum(s2 * inv_n - mean * mean, 0.0)
        y = (y - mean) * jax.lax.rsqrt(var + 1e-5)

    if use_lrelu:
        y = jnp.where(y > 0, y, 0.2 * y)                    # LeakyReLU(0.2)

    o_ref[...] = y.astype(o_ref.dtype)


# --------------------------- layer 0: im2col GEMM ------------------------------
def _first_layer(x, w, b):
    """conv(k=4, s=2, reflect pad 1) + LeakyReLU, Cin small and unpadded.

    x: (N, H, W, Cin) bf16; w: (4, 4, Cin, Cout) f32; b: (Cout,) f32.
    Contraction dim is K*K*Cin padded once to a 128 multiple (lane dim)."""
    n, h, wdt, cin = x.shape
    cout = w.shape[-1]
    cout_p = _round_up(cout, _LANE)
    assert h % 2 == 0 and wdt % 2 == 0, "stride-2 layer needs even spatial dims"
    ho, wo = h // 2, wdt // 2

    xp = jnp.pad(x, ((0, 0), (1, 1), (1, 1), (0, 0)), mode="reflect")
    # True im2col (kh-major, kw, cin-minor -> matches weight reshape order).
    patches = jnp.concatenate(
        [xp[:, kh:kh + 2 * ho:2, kw:kw + 2 * wo:2, :]
         for kh in range(_K) for kw in range(_K)], axis=-1)
    kkc = _K * _K * cin
    patches = patches.reshape(n, ho * wo, kkc)

    kkc_p = _round_up(kkc, _LANE)
    rows = ho * wo
    row_tile = min(_round_up(rows, _SUBLANE), 512)          # spatial grid tile
    rows_p = _round_up(rows, row_tile)
    patches = jnp.pad(patches, ((0, 0), (0, rows_p - rows), (0, kkc_p - kkc)))

    wf = jnp.zeros((kkc_p, cout_p), jnp.float32)
    wf = wf.at[:kkc, :cout].set(w.reshape(kkc, cout)).astype(jnp.bfloat16)
    b2 = jnp.zeros((1, cout_p), jnp.float32).at[0, :cout].set(b)

    n_tiles = rows_p // row_tile

    def call(single_buf):
        return pl.pallas_call(
            _im2col_gemm_kernel,
            out_shape=jax.ShapeDtypeStruct((n, rows_p, cout_p), jnp.bfloat16),
            grid=(n, n_tiles),
            in_specs=[
                pl.BlockSpec((None, row_tile, kkc_p), lambda i, r: (i, r, 0)),
                _weight_spec((kkc_p, cout_p), lambda i, r: (0, 0), single_buf),
                _weight_spec((1, cout_p), lambda i, r: (0, 0), single_buf),
            ],
            out_specs=pl.BlockSpec((None, row_tile, cout_p),
                                   lambda i, r: (i, r, 0)),
            compiler_params=pltpu.CompilerParams(
                dimension_semantics=("parallel", "parallel"),
                vmem_limit_bytes=_vmem_limit_bytes(),
            ),
        )(patches, wf, b2)

    out = _run_layer(call)
    return out[:, :rows, :].reshape(n, ho, wo, cout_p)


# ------------------------ layers 1..N: tap-GEMM conv ---------------------------
def _tap_conv_block(x, w, b, *, stride, use_in_norm, use_lrelu, out_dtype):
    """conv(k=4, reflect pad 1) [+ InstanceNorm] [+ LeakyReLU] as 16 shifted
    GEMMs on the MXU.  x: (N,H,W,Cin_p) bf16 with Cin_p a 128 multiple
    (padded channels are exact zeros); w: (4,4,Cin_p,Cout_p) f32; b: (Cout_p,)."""
    n, h, wdt, cinp = x.shape
    coutp = w.shape[-1]

    xp = jnp.pad(x, ((0, 0), (1, 1), (1, 1), (0, 0)), mode="reflect")
    hp, wp = h + 2, wdt + 2

    if stride == 2:
        assert hp % 2 == 0 and wp % 2 == 0, "stride-2 layer needs even padded dims"
        hp2, wp2 = hp // 2, wp // 2
        ho, wo = hp2 - 1, wp2 - 1
        w_full = wp2
        # Space-to-depth phase decomposition (layout glue, no data blow-up):
        # every in-kernel tap slice becomes unit-stride.
        phases = xp.reshape(n, hp2, 2, wp2, 2, cinp).transpose(0, 2, 4, 1, 3, 5)
        planes = phases.reshape(n, 4, hp2 * wp2, cinp)
        base_lp, over = hp2 * wp2, 1
        taps = tuple(((kh % 2) * 2 + (kw % 2), (kh // 2) * wp2 + (kw // 2))
                     for kh in range(_K) for kw in range(_K))
    else:
        ho, wo = hp - (_K - 1), wp - (_K - 1)
        w_full = wp
        planes = xp.reshape(n, 1, hp * wp, cinp)
        base_lp, over = hp * wp, _K - 1
        taps = tuple((0, kh * wp + kw) for kh in range(_K) for kw in range(_K))

    # Pad flattened axis for the safe over-read and up to a sublane multiple.
    lp = _round_up(base_lp + over, _SUBLANE)
    planes = jnp.pad(planes, ((0, 0), (0, 0), (0, lp - base_lp), (0, 0)))

    prows = ho * w_full
    n_planes = planes.shape[1]

    w_taps = w.reshape(_K * _K, cinp, coutp).astype(jnp.bfloat16)
    b2 = b.reshape(1, coutp).astype(jnp.float32)

    kernel = functools.partial(
        _tap_conv_kernel, taps=taps, prows=prows, w_full=w_full, wo=wo,
        n_valid=ho * wo, use_in_norm=use_in_norm, use_lrelu=use_lrelu)

    # TODO(synk): at production resolutions add a spatial (prows) grid axis with
    # a two-pass InstanceNorm (stats sweep marked 'arbitrary', then normalize)
    # so per-step VMEM stays bounded on v7x; at these shapes one sample/step is
    # tiny.  TODO(synk): pair adjacent taps to a K=256 contraction on v6e/v7x.
    def call(single_buf):
        return pl.pallas_call(
            kernel,
            out_shape=jax.ShapeDtypeStruct((n, prows, coutp), out_dtype),
            grid=(n,),
            in_specs=[
                pl.BlockSpec((None, n_planes, lp, cinp), lambda i: (i, 0, 0, 0)),
                _weight_spec((_K * _K, cinp, coutp), lambda i: (0, 0, 0),
                             single_buf),
                _weight_spec((1, coutp), lambda i: (0, 0), single_buf),
            ],
            out_specs=pl.BlockSpec((None, prows, coutp), lambda i: (i, 0, 0)),
            compiler_params=pltpu.CompilerParams(
                dimension_semantics=("parallel",),
                vmem_limit_bytes=_vmem_limit_bytes(),
            ),
        )(planes, w_taps, b2)

    out = _run_layer(call)
    # Drop the overlap-GEMM garbage columns; padded channels keep flowing.
    return out.reshape(n, ho, w_full, coutp)[:, :, :wo, :]


# ------------------------------ model definition -------------------------------
def init_patchgan_params(key, in_channels, features=(64, 128, 256, 512)):
    """Deterministic synthetic parameters (no checkpoint loading)."""
    chans = [in_channels] + list(features) + [1]
    params = []
    for li in range(len(chans) - 1):
        cin, cout = chans[li], chans[li + 1]
        key, wk, bk = jax.random.split(key, 3)
        w = jax.random.normal(wk, (_K, _K, cin, cout), jnp.float32) * 0.02
        b = jax.random.normal(bk, (cout,), jnp.float32) * 0.02
        params.append((w, b))
    return params


def _pad_params(w, b, cin_p, cout_p):
    k, _, cin, cout = w.shape
    wp = jnp.zeros((k, k, cin_p, cout_p), jnp.float32).at[:, :, :cin, :cout].set(w)
    bp = jnp.zeros((cout_p,), jnp.float32).at[:cout].set(b)
    return wp, bp


def patchgan_discriminator(x_nchw, params, features=(64, 128, 256, 512)):
    """Forward pass. Input/output in PyTorch NCHW layout."""
    n_feat = len(features)
    # NHWC; activations travel as bf16 between layers (f32 math in-kernel).
    x = jnp.transpose(x_nchw, (0, 2, 3, 1)).astype(jnp.bfloat16)

    # layer 0: conv(s=2) + LeakyReLU — true im2col GEMM, contraction = K*K*Cin.
    w0, b0 = params[0]
    x = _first_layer(x, w0, b0)
    cin_p = x.shape[-1]                      # round_up(features[0], 128)

    # layers 1..n-1: conv + InstanceNorm + LeakyReLU (bf16 outputs).
    for idx in range(1, n_feat):
        stride = 2 if idx != n_feat - 1 else 1
        wl, bl = params[idx]
        cout_p = _round_up(features[idx], _LANE)
        wp, bp = _pad_params(wl, bl, cin_p, cout_p)
        x = _tap_conv_block(x, wp, bp, stride=stride, use_in_norm=True,
                            use_lrelu=True, out_dtype=jnp.bfloat16)
        cin_p = cout_p

    # final conv -> 1 channel (padded to 128 for lane density), f32 output.
    wl, bl = params[-1]
    cout_p = _round_up(1, _LANE)
    wp, bp = _pad_params(wl, bl, cin_p, cout_p)
    x = _tap_conv_block(x, wp, bp, stride=1, use_in_norm=False,
                        use_lrelu=False, out_dtype=jnp.float32)

    x = x[:, :, :, :1]                                       # real channel
    return jnp.transpose(x, (0, 3, 1, 2))                     # -> NCHW


# ----------------------------------- main ---------------------------------------
if __name__ == "__main__":
    # Smallest spatial size this 4-feature PatchGAN supports with reflect pad:
    # 32 -> 16 -> 8 -> 4 -> 3 -> 2.  (A 16x16 input is degenerate: the final
    # conv would see a 1x1 map and reflect-pad(1) on a size-1 axis is invalid
    # in PyTorch too.)
    batch, in_channels, spatial = 2, 4, 32
    features = (16, 32, 64, 128)

    key = jax.random.PRNGKey(0)
    key, xk = jax.random.split(key)
    x = jax.random.normal(xk, (batch, in_channels, spatial, spatial), jnp.float32)

    params = init_patchgan_params(key, in_channels, features)

    out = patchgan_discriminator(x, params, features)
    out = jax.block_until_ready(out)

    assert out.shape == (batch, 1, 2, 2), out.shape
    assert bool(jnp.all(jnp.isfinite(out)))
    print("KERNEL_OK")
</pallas_src>

<mosaic_0001>
module attributes {stable_mosaic.version = 11 : i64} {
  func.func @_im2col_gemm_kernel(%arg0: i32, %arg1: i32, %arg2: memref<1x256x128xbf16, #tpu.memory_space<vmem>>, %arg3: memref<128x128xbf16, #tpu.memory_space<vmem>>, %arg4: memref<1x128xf32, #tpu.memory_space<vmem>>, %arg5: memref<1x256x128xbf16, #tpu.memory_space<vmem>>) attributes {dimension_semantics = [#tpu.dimension_semantics<parallel>, #tpu.dimension_semantics<parallel>], iteration_bounds = array<i64: 2, 1>, scalar_prefetch = 0 : i64, scratch_operands = 0 : i64, tpu.core_type = #tpu.core_type<tc>, window_params = [{transform_indices = @transform_0, window_bounds = array<i64: 1, 256, 128>}, {pipeline_mode = #tpu.pipeline_mode<synchronous>, transform_indices = @transform_1, window_bounds = array<i64: 128, 128>}, {pipeline_mode = #tpu.pipeline_mode<synchronous>, transform_indices = @transform_2, window_bounds = array<i64: 1, 128>}, {transform_indices = @transform_3, window_bounds = array<i64: 1, 256, 128>}]} {
    %c0 = arith.constant 0 : index
    %c0_0 = arith.constant 0 : index
    %c0_1 = arith.constant 0 : index
    %0 = vector.load %arg2[%c0, %c0_0, %c0_1] : memref<1x256x128xbf16, #tpu.memory_space<vmem>>, vector<1x256x128xbf16>
    %1 = vector.shape_cast %0 : vector<1x256x128xbf16> to vector<256x128xbf16>
    %c0_2 = arith.constant 0 : index
    %c0_3 = arith.constant 0 : index
    %2 = vector.load %arg3[%c0_2, %c0_3] : memref<128x128xbf16, #tpu.memory_space<vmem>>, vector<128x128xbf16>
    %cst = arith.constant dense<0.000000e+00> : vector<256x128xf32>
    %3 = tpu.matmul %1, %2, %cst {dimension_numbers = #tpu.dot_dimension_numbers<[1], [0], [0], [1], [0, 0, 1, 1], [], []>} : vector<256x128xbf16>, vector<128x128xbf16>, vector<256x128xf32> -> vector<256x128xf32>
    %c0_4 = arith.constant 0 : index
    %c0_5 = arith.constant 0 : index
    %4 = vector.load %arg4[%c0_4, %c0_5] : memref<1x128xf32, #tpu.memory_space<vmem>>, vector<1x128xf32>
    %5 = vector.broadcast %4 : vector<1x128xf32> to vector<256x128xf32>
    %6 = arith.addf %3, %5 : vector<256x128xf32>
    %cst_6 = arith.constant 0.000000e+00 : f32
    %7 = vector.broadcast %cst_6 : f32 to vector<256x128xf32>
    %8 = arith.cmpf ogt, %6, %7 : vector<256x128xf32>
    %cst_7 = arith.constant 2.000000e-01 : f32
    %9 = vector.broadcast %cst_7 : f32 to vector<256x128xf32>
    %10 = arith.mulf %9, %6 : vector<256x128xf32>
    %11 = arith.select %8, %6, %10 : vector<256x128xi1>, vector<256x128xf32>
    %12 = arith.truncf %11 : vector<256x128xf32> to vector<256x128xbf16>
    %c0_8 = arith.constant 0 : index
    %c0_9 = arith.constant 0 : index
    %c0_10 = arith.constant 0 : index
    %13 = vector.load %arg5[%c0_8, %c0_9, %c0_10] : memref<1x256x128xbf16, #tpu.memory_space<vmem>>, vector<1x256x128xbf16>
    %14 = vector.shape_cast %13 : vector<1x256x128xbf16> to vector<256x128xbf16>
    %15 = vector.shape_cast %12 : vector<256x128xbf16> to vector<1x256x128xbf16>
    tpu.vector_store %arg5[%c0_8, %c0_9, %c0_10], %15 {strides = array<i32>} : memref<1x256x128xbf16, #tpu.memory_space<vmem>>, vector<1x256x128xbf16>,
    return
  }
  func.func @transform_0(%arg0: i32, %arg1: i32) -> (i32, i32, i32) {
    %c0_i32 = arith.constant 0 : i32
    %c0_i32_0 = arith.constant 0 : i32
    return %arg0, %arg1, %c0_i32 : i32, i32, i32
  }
  func.func @transform_1(%arg0: i32, %arg1: i32) -> (i32, i32) {
    %c0_i32 = arith.constant 0 : i32
    %c0_i32_0 = arith.constant 0 : i32
    %c0_i32_1 = arith.constant 0 : i32
    return %c0_i32, %c0_i32_0 : i32, i32
  }
  func.func @transform_2(%arg0: i32, %arg1: i32) -> (i32, i32) {
    %c0_i32 = arith.constant 0 : i32
    %c0_i32_0 = arith.constant 0 : i32
    %c0_i32_1 = arith.constant 0 : i32
    return %c0_i32, %c0_i32_0 : i32, i32
  }
  func.func @transform_3(%arg0: i32, %arg1: i32) -> (i32, i32, i32) {
    %c0_i32 = arith.constant 0 : i32
    %c0_i32_0 = arith.constant 0 : i32
    return %arg0, %arg1, %c0_i32 : i32, i32, i32
  }
}

module attributes {stable_mosaic.version = 11 : i64} {
  func.func @_im2col_gemm_kernel(%arg0: i32, %arg1: i32, %arg2: memref<1x256x128xbf16, #tpu.memory_space<vmem>>, %arg3: memref<128x128xbf16, #tpu.memory_space<vmem>>, %arg4: memref<1x128xf32, #tpu.memory_space<vmem>>, %arg5: memref<1x256x128xbf16, #tpu.memory_space<vmem>>) attributes {dimension_semantics = [#tpu.dimension_semantics<parallel>, #tpu.dimension_semantics<parallel>], iteration_bounds = array<i64: 2, 1>, scalar_prefetch = 0 : i64, scratch_operands = 0 : i64, tpu.core_type = #tpu.core_type<tc>, window_params = [{transform_indices = @transform_0, window_bounds = array<i64: 1, 256, 128>}, {pipeline_mode = #tpu.pipeline_mode<synchronous>, transform_indices = @transform_1, window_bounds = array<i64: 128, 128>}, {pipeline_mode = #tpu.pipeline_mode<synchronous>, transform_indices = @transform_2, window_bounds = array<i64: 1, 128>}, {transform_indices = @transform_3, window_bounds = array<i64: 1, 256, 128>}]} {
    %c0 = arith.constant 0 : index
    %c0_0 = arith.constant 0 : index
    %c0_1 = arith.constant 0 : index
    %0 = vector.load %arg2[%c0, %c0_0, %c0_1] : memref<1x256x128xbf16, #tpu.memory_space<vmem>>, vector<1x256x128xbf16>
    %1 = vector.shape_cast %0 : vector<1x256x128xbf16> to vector<256x128xbf16>
    %c0_2 = arith.constant 0 : index
    %c0_3 = arith.constant 0 : index
    %2 = vector.load %arg3[%c0_2, %c0_3] : memref<128x128xbf16, #tpu.memory_space<vmem>>, vector<128x128xbf16>
    %cst = arith.constant dense<0.000000e+00> : vector<256x128xf32>
    %3 = tpu.matmul %1, %2, %cst {dimension_numbers = #tpu.dot_dimension_numbers<[1], [0], [0], [1], [0, 0, 1, 1], [], []>} : vector<256x128xbf16>, vector<128x128xbf16>, vector<256x128xf32> -> vector<256x128xf32>
    %c0_4 = arith.constant 0 : index
    %c0_5 = arith.constant 0 : index
    %4 = vector.load %arg4[%c0_4, %c0_5] : memref<1x128xf32, #tpu.memory_space<vmem>>, vector<1x128xf32>
    %5 = vector.broadcast %4 : vector<1x128xf32> to vector<256x128xf32>
    %6 = arith.addf %3, %5 : vector<256x128xf32>
    %cst_6 = arith.constant 0.000000e+00 : f32
    %7 = vector.broadcast %cst_6 : f32 to vector<256x128xf32>
    %8 = arith.cmpf ogt, %6, %7 : vector<256x128xf32>
    %cst_7 = arith.constant 2.000000e-01 : f32
    %9 = vector.broadcast %cst_7 : f32 to vector<256x128xf32>
    %10 = arith.mulf %9, %6 : vector<256x128xf32>
    %11 = arith.select %8, %6, %10 : vector<256x128xi1>, vector<256x128xf32>
    %12 = arith.truncf %11 : vector<256x128xf32> to vector<256x128xbf16>
    %c0_8 = arith.constant 0 : index
    %c0_9 = arith.constant 0 : index
    %c0_10 = arith.constant 0 : index
    %13 = vector.load %arg5[%c0_8, %c0_9, %c0_10] : memref<1x256x128xbf16, #tpu.memory_space<vmem>>, vector<1x256x128xbf16>
    %14 = vector.shape_cast %13 : vector<1x256x128xbf16> to vector<256x128xbf16>
    %15 = vector.shape_cast %12 : vector<256x128xbf16> to vector<1x256x128xbf16>
    tpu.vector_store %arg5[%c0_8, %c0_9, %c0_10], %15 {strides = array<i32>} : memref<1x256x128xbf16, #tpu.memory_space<vmem>>, vector<1x256x128xbf16>,
    return
  }
  func.func @transform_0(%arg0: i32, %arg1: i32) -> (i32, i32, i32) {
    %c0_i32 = arith.constant 0 : i32
    %c0_i32_0 = arith.constant 0 : i32
    return %arg0, %arg1, %c0_i32 : i32, i32, i32
  }
  func.func @transform_1(%arg0: i32, %arg1: i32) -> (i32, i32) {
    %c0_i32 = arith.constant 0 : i32
    %c0_i32_0 = arith.constant 0 : i32
    %c0_i32_1 = arith.constant 0 : i32
    return %c0_i32, %c0_i32_0 : i32, i32
  }
  func.func @transform_2(%arg0: i32, %arg1: i32) -> (i32, i32) {
    %c0_i32 = arith.constant 0 : i32
    %c0_i32_0 = arith.constant 0 : i32
    %c0_i32_1 = arith.constant 0 : i32
    return %c0_i32, %c0_i32_0 : i32, i32
  }
  func.func @transform_3(%arg0: i32, %arg1: i32) -> (i32, i32, i32) {
    %c0_i32 = arith.constant 0 : i32
    %c0_i32_0 = arith.constant 0 : i32
    return %arg0, %arg1, %c0_i32 : i32, i32, i32
  }
}

</mosaic_0001>

<bundles_post_ra>
// kernel: tpu_custom_call.1
= control target key start
LH: loop header
LB: loop body
LE: loop exit
PB: predicated region body
PF: predicated region fallthrough
CT: control target
= control target key end

     0   :  { %8 = vsyncpa [#allocation3], 0  ;;  %s1828_s0 = inlined_call_operand.hbm [shape: bf16[2,256,128], index: 0, kind: input, shape index: {}]   ;;  %s1829_s1 = inlined_call_operand.hbm [shape: bf16[128,128], index: 1, kind: input, shape index: {}]   ;;  %s1830_s2 = inlined_call_operand.vmem [shape: f32[1,128], index: 2, kind: input, shape index: {}]   ;;  %s1831_s3 = inlined_call_operand.hbm [shape: bf16[2,256,128], index: 3, kind: output, shape index: {}]  }
   0x1   :  { %10 = vsyncpa [#allocation3 + $0x1], 0 }
   0x2   :  { %11 = vsyncpa [#allocation6], 0 }
   0x3   :  { %12 = vsyncpa [#allocation4], 0 }
   0x4   :  { %14 = vsyncpa [#allocation4 + $0x1], 0  ;;  %s1519_s12 = smov 0   ;;  %s1521_s13 = smov 0  }
   0x5   :  { %s1523_s14 = smov 0   ;;  %s1525_s15 = smov 0  }
   0x6   :  { %s1527_s16 = smov 0   ;;  %s1529_s17 = smov 0  }
   0x7 LB: > { %s954_s18 = sadd.s32 4294967295, %s1490_s17   ;;  %s955_s19 = sadd.s32 4294967294, %s1490_s17   ;;  %s1490_s17 = sphi %s1529_s17, %s20_s17   ;;  %s1486_s16 = sphi %s1527_s16, %s1855_s16   ;;  %s1482_s15 = sphi %s1525_s15, %s1854_s15   ;;  %s1478_s14 = sphi %s1523_s14, %s1853_s14   ;;  %s1474_s13 = sphi %s1521_s13, %s1852_s13   ;;  %s1470_s12 = sphi %s1519_s12, %s1851_s12  }
   0x8   : > { %p54_p0 = scmp.ne.s32.totalorder %s1474_s13, %s1470_s12  ;;  %p1553_p1 = scmp.eq.s32.totalorder %s954_s18, 0 }
   0x9   : > { %p1557_p2 = scmp.eq.s32.totalorder %s954_s18, 1  ;;  %p128_p3 = scmp.eq.s32.totalorder %s955_s19, 1 }
   0xa   : > { %s1836_s20 = scalar_select %p1553_p1, 1, 0 }
   0xb   : > { %s1837_s21 = scalar_select %p1557_p2, 1, 0 }
   0xc   : > { %p1563_p4 = por %p1553_p1, %p54_p0  ;;  %p956_p5 = scmp.ge.s32.totalorder %s1490_s17, 1 }
   0xd   : > { %p1568_p6 = por %p128_p3, %p54_p0  ;;  %p135_p7 = scmp.lt.s32.totalorder %s1490_s17, 3 }
   0xe   : > { %s1838_s22 = scalar_select %p1563_p4, 1, 0 }
   0xf   : > { %s1839_s23 = scalar_select %p1568_p6, 1, 0 }
  0x10   : > { %p1573_p8 = pnand %p956_p5, %p135_p7  ;;  %s1492_s25 = smov [#allocation5]  }
  0x11   : > { %s147_s26 = sshll.u32 %s1492_s25, 4  ;;  %s32_s28 = sadd.s32 1, %s1486_s16  ;;  %s148_s26 = int_to_ptr.vmem [resolvable:$true] %s147_s26 }
  0x12   : > { %s1840_s24 = scalar_select %p1573_p8, 1, 0 }
  0x13   : > { %p1253_p9 = pneg %p1573_p8  ;;  %s1346_s4 = scalar_lea.hbm %s1829_s1, 1024 }
  0x14   : > { %p1347_p12 = scmp.ne.s32.totalorder %s1829_s1, %s1346_s4  ;;  %p1353_p5 = scmp.lt.u32.totalorder %s1346_s4, %s1829_s1 }
  0x15   : > { %p1582_p11 = pnand %p1253_p9, %p1553_p1 }
  0x17   : > { %p1348_p13 = pneg %p1582_p11 }
  0x19   : > { %p1349_p0 = pnand %p1348_p13, %p1347_p12 }
  0x1b   : > { %p1350_p3 = pneg %p1349_p0 }
  0x1d   : > { %p1355_p7 = pnand %p1353_p5, %p1350_p3 }
  0x1f   : > { %1358 = shalt.err (!%p1355_p7)
}
  0x20   : > { %s1359_s9 = scalar_lea.vmem %s148_s26, 1024  ;;  %p1367_p1 = scmp.lt.s32.totalorder %s148_s26, %s148_s26 }
  0x21   : > { %p1360_p9 = scmp.ne.s32.totalorder %s148_s26, %s1359_s9  ;;  %p1368_p4 = scmp.lt.s32.totalorder %s1359_s9, %s1359_s9 }
  0x23   : > { %p1362_p10 = pnand %p1360_p9, %p1348_p13  ;;  %p1369_p8 = por %p1368_p4, %p1367_p1 }
  0x25   : > { %p1363_p6 = pneg %p1362_p10 }
  0x27   : > { %p1370_p2 = pnand %p1369_p8, %p1363_p6 }
  0x29   : > { %1373 = shalt.err (!%p1370_p2)
}
  0x2a   : > { %s1493_s10 = smov 64   ;;  %s1494_s11 = smov 4  }
  0x2b   : > { %1256 = dma.hbm_to_vmem [thread:$0]  (!%p1582_p11), %s1829_s1, 1024, %s148_s26, [#allocation6], %s1493_s10, %s1493_s10, %s1494_s11  }
  0x2c   : > { %p34_p1 = scmp.ge.s32.totalorder %s32_s28, 2  ;;  %s41_s25 = sadd.s32 1, %s1478_s14 }
  0x2d   : > { %p48_p2 = scmp.ne.s32.totalorder %s1478_s14, %s1474_s13  ;;  %p49_p4 = scmp.eq.s32.totalorder %s1490_s17, 0 }
  0x2e   : > { %s1857_s28 = smov (%p34_p1, %s32_s28), 0  ;;  %p1843_p8 = scmp.ne.s32.totalorder %s1837_s21, 0 }
  0x2f   : > { %p1612_p6 = por %p49_p4, %p48_p2  ;;  %s36_s30 = ssub.s32 %s1486_s16, %s1857_s28 }
  0x30   : > { %p1618_p10 = por %p1843_p8, %p48_p2  ;;  %p1266_p12 = scmp.lt.s32.totalorder %s1490_s17, 2 }
  0x31   : > { %p39_p11 = scmp.eq.s32.totalorder %s36_s30, 0  ;;  %s164_s26 = sand.u32 1, %s1478_s14  }
  0x32   : > { %s959_s4 = sshll.u32 %s164_s26, 7  ;;  %s1028_s6 = sshll.u32 %s1486_s16, 11 }
  0x33   : > { %s1627_s5 = scalar_select %p39_p11, %s1478_s14, %s41_s25  }
  0x34   : > { %s1633_s9 = scalar_lea.hbm %s1828_s0, %s1028_s6  ;;  %s168_s21 = scalar_lea.vmem [#allocation2], %s959_s4 }
  0x35   : > { %s177_s18 = sshll.u32 %s168_s21, 4  ;;  %p1639_p13 = pnand %p1266_p12, %p1612_p6  ;;  %s1635_s18 = int_to_ptr.vmem [resolvable:$true] %s177_s18 }
  0x36   : > { %s1643_s25 = scalar_lea.sflag [#allocation3], %s164_s26  ;;  %s1374_s30 = scalar_lea.hbm %s1633_s9, 2048 }
  0x37   : > { %p1375_p0 = scmp.ne.s32.totalorder %s1633_s9, %s1374_s30  ;;  %p1376_p3 = pneg %p1639_p13 }
  0x38   : > { %s1379_s29 = scalar_lea.hbm %s1828_s0, 4096  ;;  %p1380_p9 = scmp.lt.u32.totalorder %s1633_s9, %s1828_s0 }
  0x39   : > { %p1377_p5 = pnand %p1376_p3, %p1375_p0  ;;  %p1381_p1 = scmp.lt.u32.totalorder %s1379_s29, %s1374_s30 }
  0x3a   : > { %p1383_p4 = scmp.lt.u32.totalorder %s1374_s30, %s1633_s9 }
  0x3b   : > { %p1378_p7 = pneg %p1377_p5  ;;  %p1382_p2 = por %p1381_p1, %p1380_p9 }
  0x3d   : > { %p1384_p6 = por %p1383_p4, %p1382_p2 }
  0x3f   : > { %p1385_p8 = pnand %p1384_p6, %p1378_p7 }
  0x41   : > { %1388 = shalt.err (!%p1385_p8)
}
  0x42   : > { %s1389_s26 = scalar_lea.vmem %s1635_s18, 2048  ;;  %s1495_s21 = smov [#allocation2]  }
  0x43   : > { %p1390_p12 = scmp.ne.s32.totalorder %s1635_s18, %s1389_s26  ;;  %s1394_s4 = sshll.u32 %s1495_s21, 4  ;;  %s1395_s4 = int_to_ptr.vmem [resolvable:$false] %s1394_s4 }
  0x44   : > { %s1396_s6 = scalar_lea.vmem %s1395_s4, 4096  ;;  %p1397_p5 = scmp.lt.s32.totalorder %s1635_s18, %s1395_s4 }
  0x45   : > { %p1392_p11 = pnand %p1390_p12, %p1376_p3  ;;  %p1398_p9 = scmp.lt.s32.totalorder %s1396_s6, %s1389_s26 }
  0x47   : > { %p1393_p0 = pneg %p1392_p11  ;;  %p1399_p1 = por %p1398_p9, %p1397_p5 }
  0x49   : > { %p1400_p2 = pnand %p1399_p1, %p1393_p0 }
  0x4b   : > { %1403 = shalt.err (!%p1400_p2)
}
  0x4c   : > { %1260 = dma.hbm_to_vmem [thread:$0]  (!%p1639_p13), %s1633_s9, 2048, %s1635_s18, %s1643_s25, %s1493_s10, %s1493_s10, %s1494_s11  }
  0x4d   : > { %p1846_p3 = scmp.ne.s32.totalorder %s1840_s24, 0 }
  0x4e   : > { %s1677_s30 = sand.u32 (!%p1846_p3), 1, %s1474_s13   ;;  %p1847_p7 = scmp.ne.s32.totalorder (!%p1846_p3), %s1838_s22, 0 }
  0x4f   : > { %189 = sbr.rel (%p1846_p3) target bundleno = 392 (0x188), region = 32  ;;  %s963_s29 = sshll.u32 (!%p1846_p3), %s1677_s30, 7 }
  0x50   : > { %s192_s7 = scalar_lea.sflag (!%p1846_p3), [#allocation3], %s1677_s30  ;;  %s1683_s19 = scalar_lea.vmem (!%p1846_p3), [#allocation2], %s963_s29 }
  0x56   : > { %1457 = dma.done.wait (%p1847_p7), %s192_s7, 2048  }
  0x57   : > { %1459 = vsyncadd (%p1847_p7), %s192_s7, 4294965248  ;;  %p1848_p13 = scmp.ne.s32.totalorder %s1836_s20, 0 }
  0x59   : > { %1461 = dma.done.wait (%p1848_p13), [#allocation6], 1024  }
  0x5a   : > { %1463 = vsyncadd (%p1848_p13), [#allocation6], 4294966272  ;;  %v1322_v0 = vld [vmem:[#allocation5] sm:$0xff]   ;;  %v1323_v1 = vld [vmem:[#allocation5 + $0x8] sm:$0xff]   ;;  %s1728_s24 = scalar_lea.vmem [#allocation7], %s963_s29  ;;  %s1061_s10 = sshll.u32 %s1482_s15, 11 }
  0x5b   : > { %1181 = vmatprep.subr.bf16.mxu0 %v1322_v0  ;;  %1229 = vmatprep.subr.bf16.mxu1 %v1322_v0  ;;  %v1324_v2 = vld [vmem:[#allocation5 + $0x10] sm:$0xff]   ;;  %v1325_v3 = vld [vmem:[#allocation5 + $0x18] sm:$0xff]   ;;  %v1330_v4 = vld [vmem:[%s1683_s19] sm:$0xff]   ;;  %s857_s11 = sshll.u32 %s1728_s24, 4  ;;  %s1776_s25 = scalar_lea.hbm %s1831_s3, %s1061_s10  ;;  %s1778_s11 = int_to_ptr.vmem [resolvable:$true] %s857_s11 }
  0x5c   : > { %1182 = vmatpush3.bf16.msra.mxu0 %v1322_v0  ;;  %1237 = vmatpush3.bf16.msra.mxu1 %v1322_v0  ;;  %v1331_v5 = vld [vmem:[%s1683_s19 + $0x40] sm:$0xff]   ;;  %v1327_v7 = vld [vmem:[#allocation5 + $0x28] sm:$0xff]   ;;  %v1328_v8 = vld [vmem:[#allocation5 + $0x30] sm:$0xff]   ;;  %s842_s15 = scalar_lea.sflag [#allocation4], %s1677_s30  ;;  %s1404_s8 = scalar_lea.vmem %s1778_s11, 2048 }
  0x5d   : > { %1183 = vmatprep.subr.bf16.mxu0 %v1323_v1  ;;  %1230 = vmatprep.subr.bf16.mxu1 %v1323_v1  ;;  %v1326_v6 = vld [vmem:[#allocation5 + $0x20] sm:$0xff]   ;;  %v1329_v9 = vld [vmem:[#allocation5 + $0x38] sm:$0xff]   ;;  %v1332_v10 = vld [vmem:[%s1683_s19 + $0x8] sm:$0xff]   ;;  %p1405_p4 = scmp.ne.s32.totalorder %s1778_s11, %s1404_s8  ;;  %s1496_s26 = smov [#allocation7]  }
  0x5e   : > { %1197 = vmatprep.mubr.bf16.mxu0 %v1330_v4  ;;  %1213 = vmatprep.mubr.bf16.mxu1 %v1331_v5  ;;  %v1333_v11 = vld [vmem:[%s1683_s19 + $0x48] sm:$0xff]   ;;  %v1334_v12 = vld [vmem:[%s1683_s19 + $0x10] sm:$0xff]   ;;  %v1336_v14 = vld [vmem:[%s1683_s19 + $0x18] sm:$0xff]   ;;  %s1408_s21 = sshll.u32 %s1496_s26, 4  ;;  %s1409_s21 = int_to_ptr.vmem [resolvable:$false] %s1408_s21 }
  0x5f   : > { %v1335_v13 = vld [vmem:[%s1683_s19 + $0x50] sm:$0xff]   ;;  %v1337_v15 = vld [vmem:[%s1683_s19 + $0x58] sm:$0xff]   ;;  %v1338_v16 = vld [vmem:[%s1683_s19 + $0x20] sm:$0xff]   ;;  %p1406_p6 = pnand %p1405_p4, %p1618_p10  ;;  %s1410_s4 = scalar_lea.vmem %s1409_s21, 4096 }
  0x60   : > { %1184 = vmatpush3.bf16.msra.mxu0 %v1323_v1  ;;  %1238 = vmatpush3.bf16.msra.mxu1 %v1323_v1  ;;  %v1339_v17 = vld [vmem:[%s1683_s19 + $0x60] sm:$0xff]   ;;  %v1340_v18 = vld [vmem:[%s1683_s19 + $0x28] sm:$0xff]   ;;  %v1342_v20 = vld [vmem:[%s1683_s19 + $0x30] sm:$0xff]   ;;  %p1411_p12 = scmp.lt.s32.totalorder %s1778_s11, %s1409_s21  ;;  %p1412_p11 = scmp.lt.s32.totalorder %s1410_s4, %s1404_s8 }
  0x61   : > { %1185 = vmatprep.subr.bf16.mxu0 %v1324_v2  ;;  %1231 = vmatprep.subr.bf16.mxu1 %v1324_v2  ;;  %v1341_v19 = vld [vmem:[%s1683_s19 + $0x68] sm:$0xff]   ;;  %v1343_v21 = vld [vmem:[%s1683_s19 + $0x70] sm:$0xff]   ;;  %v1344_v22 = vld [vmem:[%s1683_s19 + $0x38] sm:$0xff]   ;;  %p1407_p8 = pneg %p1406_p6 }
  0x62   : > { %v1345_v23 = vld [vmem:[%s1683_s19 + $0x78] sm:$0xff]   ;;  %v1712_v24 = vld [vmem:[%s1830_s2] ss:$0 sm:$0xff]  ;;  %p1413_p0 = por %p1412_p11, %p1411_p12 }
  0x64   : > { %1186 = vmatpush3.bf16.msra.mxu0 %v1324_v2  ;;  %1239 = vmatpush3.bf16.msra.mxu1 %v1324_v2  ;;  %p1414_p5 = pnand %p1413_p0, %p1407_p8 }
  0x65   : > { %1187 = vmatprep.subr.bf16.mxu0 %v1325_v3  ;;  %1232 = vmatprep.subr.bf16.mxu1 %v1325_v3 }
  0x68   : > { %1188 = vmatpush3.bf16.msra.mxu0 %v1325_v3  ;;  %1240 = vmatpush3.bf16.msra.mxu1 %v1325_v3 }
  0x69   : > { %1189 = vmatprep.subr.bf16.mxu0 %v1326_v6  ;;  %1233 = vmatprep.subr.bf16.mxu1 %v1326_v6 }
  0x6c   : > { %1190 = vmatpush3.bf16.msra.mxu0 %v1326_v6  ;;  %1241 = vmatpush3.bf16.msra.mxu1 %v1326_v6 }
  0x6d   : > { %1191 = vmatprep.subr.bf16.mxu0 %v1327_v7  ;;  %1234 = vmatprep.subr.bf16.mxu1 %v1327_v7 }
  0x70   : > { %1192 = vmatpush3.bf16.msra.mxu0 %v1327_v7  ;;  %1242 = vmatpush3.bf16.msra.mxu1 %v1327_v7 }
  0x71   : > { %1193 = vmatprep.subr.bf16.mxu0 %v1328_v8  ;;  %1235 = vmatprep.subr.bf16.mxu1 %v1328_v8 }
  0x74   : > { %1194 = vmatpush3.bf16.msra.mxu0 %v1328_v8  ;;  %1243 = vmatpush3.bf16.msra.mxu1 %v1328_v8 }
  0x75   : > { %1195 = vmatprep.subr.bf16.mxu0 %v1329_v9  ;;  %1236 = vmatprep.subr.bf16.mxu1 %v1329_v9 }
  0x78   : > { %1196 = vmatpush3.bf16.msra.mxu0 %v1329_v9  ;;  %1244 = vmatpush3.bf16.msra.mxu1 %v1329_v9 }
  0x7b   : > { %1198 = vmatmul.mubr.bf16.vlgmr.msra.gmra.mrb[0].mxu0 %v1332_v10  ;;  %1214 = vmatmul.mubr.bf16.vlgmr.msra.gmra.mrb[0].mxu1 %v1333_v11 }
  0x7c   : > { %1201 = vmatprep.mubr.bf16.mxu0 %v1334_v12  ;;  %1217 = vmatprep.mubr.bf16.mxu1 %v1335_v13 }
  0x83   : > { %1202 = vmatmul.mubr.bf16.gmra.mrb[4].mxu0 %v1336_v14  ;;  %1218 = vmatmul.mubr.bf16.gmra.mrb[4].mxu1 %v1337_v15 }
  0x84   : > { %1205 = vmatprep.mubr.bf16.mxu0 %v1338_v16  ;;  %1221 = vmatprep.mubr.bf16.mxu1 %v1339_v17 }
  0x8b   : > { %1206 = vmatmul.mubr.bf16.gmra.mrb[8].mxu0 %v1340_v18  ;;  %1222 = vmatmul.mubr.bf16.gmra.mrb[8].mxu1 %v1341_v19 }
  0x8c   : > { %1209 = vmatprep.mubr.bf16.mxu0 %v1342_v20  ;;  %1225 = vmatprep.mubr.bf16.mxu1 %v1343_v21 }
  0x93   : > { %1210 = vmatmul.mubr.bf16.gmra.mrb[12].mxu0 %v1344_v22  ;;  %1226 = vmatmul.mubr.bf16.gmra.mrb[12].mxu1 %v1345_v23 }
 0x14e   : > { %v1199_v25 = vpop.f32.mrb[0].mxu0  ;;  %v1215_v26 = vpop.f32.mrb[0].mxu1 }
 0x14f   : > { %v467_v27 = vadd.f32 %v1199_v25, %v1712_v24  ;;  %v531_v28 = vadd.f32 %v1215_v26, %v1712_v24  ;;  %v458_v29 = vpop.f32.mrb[1].mxu0  ;;  %v522_v30 = vpop.f32.mrb[1].mxu1 }
 0x150   : > { %v459_v31 = vadd.f32 %v1712_v24, %v458_v29  ;;  %v523_v32 = vadd.f32 %v1712_v24, %v522_v30  ;;  %v1200_v33 = vpop.f32.mrb[2].mxu0  ;;  %v1216_v34 = vpop.f32.mrb[2].mxu1 }
 0x151   : > { %vm587_vm0 = vcmp.gt.f32.partialorder %v467_v27, 0.0  ;;  %v619_v35 = vmul.f32 0.2, %v467_v27  ;;  %vm603_vm1 = vcmp.gt.f32.partialorder %v531_v28, 0.0  ;;  %v635_v36 = vmul.f32 0.2, %v531_v28 }
 0x152   : > { %vm585_vm2 = vcmp.gt.f32.partialorder %v459_v31, 0.0  ;;  %v617_v37 = vmul.f32 0.2, %v459_v31  ;;  %vm601_vm3 = vcmp.gt.f32.partialorder %v523_v32, 0.0  ;;  %v633_v38 = vmul.f32 0.2, %v523_v32 }
 0x153   : > { %v470_v39 = vadd.f32 %v1200_v33, %v1712_v24  ;;  %v534_v40 = vadd.f32 %v1216_v34, %v1712_v24  ;;  %v461_v41 = vpop.f32.mrb[3].mxu0  ;;  %v525_v42 = vpop.f32.mrb[3].mxu1  ;;  %v651_v43 = vsel %vm587_vm0, %v467_v27, %v619_v35  ;;  %v667_v44 = vsel %vm603_vm1, %v531_v28, %v635_v36 }
 0x154   : > { %v462_v45 = vadd.f32 %v1712_v24, %v461_v41  ;;  %v526_v46 = vadd.f32 %v1712_v24, %v525_v42  ;;  %v649_v51 = vsel %vm585_vm2, %v459_v31, %v617_v37  ;;  %v665_v52 = vsel %vm601_vm3, %v523_v32, %v633_v38 }
 0x155   : > { %vm588_vm4 = vcmp.gt.f32.partialorder %v470_v39, 0.0  ;;  %v620_v47 = vmul.f32 0.2, %v470_v39  ;;  %vm604_vm5 = vcmp.gt.f32.partialorder %v534_v40, 0.0  ;;  %v636_v48 = vmul.f32 0.2, %v534_v40 }
 0x156   : > { %vm586_vm6 = vcmp.gt.f32.partialorder %v462_v45, 0.0  ;;  %v618_v49 = vmul.f32 0.2, %v462_v45  ;;  %vm602_vm7 = vcmp.gt.f32.partialorder %v526_v46, 0.0  ;;  %v634_v50 = vmul.f32 0.2, %v526_v46 }
 0x157   : > { %v652_v53 = vsel %vm588_vm4, %v470_v39, %v620_v47  ;;  %v668_v54 = vsel %vm604_vm5, %v534_v40, %v636_v48  ;;  %v1203_v55 = vpop.f32.mrb[4].mxu0  ;;  %v1219_v56 = vpop.f32.mrb[4].mxu1 }
 0x158   : > { %v1070_v57 = vpack.c.bf16 %v652_v53, %v651_v43  ;;  %v1110_v58 = vpack.c.bf16 %v668_v54, %v667_v44  ;;  %v650_v59 = vsel %vm586_vm6, %v462_v45, %v618_v49  ;;  %v666_v60 = vsel %vm602_vm7, %v526_v46, %v634_v50  ;;  %v474_v61 = vpop.f32.mrb[5].mxu0  ;;  %v538_v62 = vpop.f32.mrb[5].mxu1 }
 0x159   : > { %v1065_v63 = vpack.c.bf16 %v650_v59, %v649_v51  ;;  %v1105_v0 = vpack.c.bf16 %v666_v60, %v665_v52  ;;  %v483_v1 = vadd.f32 %v1203_v55, %v1712_v24  ;;  %v547_v2 = vadd.f32 %v1219_v56, %v1712_v24  ;;  %v1204_v3 = vpop.f32.mrb[6].mxu0  ;;  %v1220_v4 = vpop.f32.mrb[6].mxu1 }
 0x15a   : > { %1142 = vst [vmem:[%s1728_s24 + $0x8] sm:$0xff] %v1070_v57   ;;  %1150 = vst [vmem:[%s1728_s24 + $0x48] sm:$0xff] %v1110_v58   ;;  %v475_v5 = vadd.f32 %v1712_v24, %v474_v61  ;;  %v539_v6 = vadd.f32 %v1712_v24, %v538_v62  ;;  %v486_v7 = vadd.f32 %v1204_v3, %v1712_v24  ;;  %v477_v9 = vpop.f32.mrb[7].mxu0  ;;  %v541_v10 = vpop.f32.mrb[7].mxu1 }
 0x15b   : > { %v550_v8 = vadd.f32 %v1220_v4, %v1712_v24  ;;  %1066 = vst [vmem:[%s1728_s24] sm:$0xff] %v1065_v63   ;;  %1149 = vst [vmem:[%s1728_s24 + $0x40] sm:$0xff] %v1105_v0   ;;  %vm591_vm8 = vcmp.gt.f32.partialorder %v483_v1, 0.0  ;;  %v623_v11 = vmul.f32 0.2, %v483_v1  ;;  %vm607_vm9 = vcmp.gt.f32.partialorder %v547_v2, 0.0 }
 0x15c   : > { %v639_v12 = vmul.f32 0.2, %v547_v2  ;;  %vm589_vm10 = vcmp.gt.f32.partialorder %v475_v5, 0.0  ;;  %v621_v13 = vmul.f32 0.2, %v475_v5  ;;  %vm605_vm11 = vcmp.gt.f32.partialorder %v539_v6, 0.0 }
 0x15d   : > { %v655_v14 = vsel %vm591_vm8, %v483_v1, %v623_v11  ;;  %v637_v15 = vmul.f32 0.2, %v539_v6  ;;  %vm592_vm12 = vcmp.gt.f32.partialorder %v486_v7, 0.0  ;;  %v624_v16 = vmul.f32 0.2, %v486_v7 }
 0x15e   : > { %v671_v17 = vsel %vm607_vm9, %v547_v2, %v639_v12  ;;  %v653_v18 = vsel %vm589_vm10, %v475_v5, %v621_v13  ;;  %vm608_vm13 = vcmp.gt.f32.partialorder %v550_v8, 0.0  ;;  %v640_v19 = vmul.f32 0.2, %v550_v8  ;;  %v1207_v20 = vpop.f32.mrb[8].mxu0  ;;  %v1223_v21 = vpop.f32.mrb[8].mxu1 }
 0x15f   : > { %v656_v22 = vsel %vm592_vm12, %v486_v7, %v624_v16  ;;  %v478_v23 = vadd.f32 %v1712_v24, %v477_v9  ;;  %v542_v25 = vadd.f32 %v1712_v24, %v541_v10  ;;  %v499_v26 = vadd.f32 %v1207_v20, %v1712_v24  ;;  %v490_v27 = vpop.f32.mrb[9].mxu0  ;;  %v554_v28 = vpop.f32.mrb[9].mxu1 }
 0x160   : > { %v1080_v29 = vpack.c.bf16 %v656_v22, %v655_v14  ;;  %v672_v30 = vsel %vm608_vm13, %v550_v8, %v640_v19  ;;  %v563_v31 = vadd.f32 %v1223_v21, %v1712_v24  ;;  %v491_v32 = vadd.f32 %v1712_v24, %v490_v27  ;;  %v1208_v33 = vpop.f32.mrb[10].mxu0  ;;  %v1224_v34 = vpop.f32.mrb[10].mxu1 }
 0x161   : > { %v1120_v35 = vpack.c.bf16 %v672_v30, %v671_v17  ;;  %vm590_vm14 = vcmp.gt.f32.partialorder %v478_v23, 0.0  ;;  %v622_v36 = vmul.f32 0.2, %v478_v23  ;;  %vm606_vm15 = vcmp.gt.f32.partialorder %v542_v25, 0.0  ;;  %v493_v37 = vpop.f32.mrb[11].mxu0  ;;  %v557_v38 = vpop.f32.mrb[11].mxu1 }
 0x162   : > { %1144 = vst [vmem:[%s1728_s24 + $0x18] sm:$0xff] %v1080_v29   ;;  %v638_v39 = vmul.f32 0.2, %v542_v25  ;;  %vm595_vm0 = vcmp.gt.f32.partialorder %v499_v26, 0.0  ;;  %v627_v40 = vmul.f32 0.2, %v499_v26  ;;  %v669_v41 = vsel %vm605_vm11, %v539_v6, %v637_v15 }
 0x163   : > { %vm611_vm1 = vcmp.gt.f32.partialorder %v563_v31, 0.0  ;;  %1152 = vst [vmem:[%s1728_s24 + $0x58] sm:$0xff] %v1120_v35   ;;  %v654_v42 = vsel %vm590_vm14, %v478_v23, %v622_v36  ;;  %v643_v43 = vmul.f32 0.2, %v563_v31  ;;  %vm593_vm2 = vcmp.gt.f32.partialorder %v491_v32, 0.0 }
 0x164   : > { %v1075_v44 = vpack.c.bf16 %v654_v42, %v653_v18  ;;  %v670_v45 = vsel %vm606_vm15, %v542_v25, %v638_v39  ;;  %v625_v46 = vmul.f32 0.2, %v491_v32  ;;  %v555_v47 = vadd.f32 %v1712_v24, %v554_v28 }
 0x165   : > { %v1115_v48 = vpack.c.bf16 %v670_v45, %v669_v41  ;;  %v659_v49 = vsel %vm595_vm0, %v499_v26, %v627_v40  ;;  %v675_v50 = vsel %vm611_vm1, %v563_v31, %v643_v43  ;;  %v502_v51 = vadd.f32 %v1208_v33, %v1712_v24 }
 0x166   : > { %1143 = vst [vmem:[%s1728_s24 + $0x10] sm:$0xff] %v1075_v44   ;;  %vm609_vm3 = vcmp.gt.f32.partialorder %v555_v47, 0.0  ;;  %v641_v52 = vmul.f32 0.2, %v555_v47  ;;  %v566_v53 = vadd.f32 %v1224_v34, %v1712_v24  ;;  %v494_v54 = vadd.f32 %v1712_v24, %v493_v37  ;;  %v1211_v55 = vpop.f32.mrb[12].mxu0  ;;  %v1227_v56 = vpop.f32.mrb[12].mxu1 }
 0x167   : > { %1151 = vst [vmem:[%s1728_s24 + $0x50] sm:$0xff] %v1115_v48   ;;  %vm596_vm4 = vcmp.gt.f32.partialorder %v502_v51, 0.0  ;;  %v628_v57 = vmul.f32 0.2, %v502_v51  ;;  %v558_v58 = vadd.f32 %v1712_v24, %v557_v38  ;;  %v515_v59 = vadd.f32 %v1211_v55, %v1712_v24  ;;  %v506_v60 = vpop.f32.mrb[13].mxu0  ;;  %v570_v61 = vpop.f32.mrb[13].mxu1 }
 0x168   : > { %v657_v62 = vsel %vm593_vm2, %v491_v32, %v625_v46  ;;  %vm612_vm5 = vcmp.gt.f32.partialorder %v566_v53, 0.0  ;;  %v644_v63 = vmul.f32 0.2, %v566_v53  ;;  %vm594_vm6 = vcmp.gt.f32.partialorder %v494_v54, 0.0  ;;  %v1212_v0 = vpop.f32.mrb[14].mxu0  ;;  %v1228_v1 = vpop.f32.mrb[14].mxu1 }
 0x169   : > { %v660_v2 = vsel %vm596_vm4, %v502_v51, %v628_v57  ;;  %v626_v3 = vmul.f32 0.2, %v494_v54  ;;  %vm610_vm7 = vcmp.gt.f32.partialorder %v558_v58, 0.0  ;;  %v642_v4 = vmul.f32 0.2, %v558_v58  ;;  %v509_v5 = vpop.f32.mrb[15].mxu0 }
 0x16a   : > { %v673_v6 = vsel %vm609_vm3, %v555_v47, %v641_v52  ;;  %v1090_v7 = vpack.c.bf16 %v660_v2, %v659_v49  ;;  %v676_v8 = vsel %vm612_vm5, %v566_v53, %v644_v63  ;;  %v631_v9 = vmul.f32 0.2, %v515_v59  ;;  %v573_v10 = vpop.f32.mrb[15].mxu1 }
 0x16b   : > { %v1130_v11 = vpack.c.bf16 %v676_v8, %v675_v50  ;;  %v658_v12 = vsel %vm594_vm6, %v494_v54, %v626_v3  ;;  %v674_v13 = vsel %vm610_vm7, %v558_v58, %v642_v4  ;;  %v579_v14 = vadd.f32 %v1227_v56, %v1712_v24 }
 0x16c   : > { %1146 = vst [vmem:[%s1728_s24 + $0x28] sm:$0xff] %v1090_v7   ;;  %v1085_v15 = vpack.c.bf16 %v658_v12, %v657_v62  ;;  %v1125_v16 = vpack.c.bf16 %v674_v13, %v673_v6  ;;  %vm599_vm8 = vcmp.gt.f32.partialorder %v515_v59, 0.0  ;;  %v507_v17 = vadd.f32 %v1712_v24, %v506_v60 }
 0x16d   : > { %1154 = vst [vmem:[%s1728_s24 + $0x68] sm:$0xff] %v1130_v11   ;;  %vm615_vm9 = vcmp.gt.f32.partialorder %v579_v14, 0.0  ;;  %v647_v18 = vmul.f32 0.2, %v579_v14  ;;  %v571_v19 = vadd.f32 %v1712_v24, %v570_v61  ;;  %v518_v20 = vadd.f32 %v1212_v0, %v1712_v24 }
 0x16e   : > { %1145 = vst [vmem:[%s1728_s24 + $0x20] sm:$0xff] %v1085_v15   ;;  %1153 = vst [vmem:[%s1728_s24 + $0x60] sm:$0xff] %v1125_v16   ;;  %v629_v21 = vmul.f32 0.2, %v507_v17  ;;  %v582_v22 = vadd.f32 %v1228_v1, %v1712_v24  ;;  %v510_v23 = vadd.f32 %v1712_v24, %v509_v5  ;;  %v663_v25 = vsel %vm599_vm8, %v515_v59, %v631_v9 }
 0x16f   : > { %vm597_vm10 = vcmp.gt.f32.partialorder %v507_v17, 0.0  ;;  %vm600_vm11 = vcmp.gt.f32.partialorder %v518_v20, 0.0  ;;  %v679_v26 = vsel %vm615_vm9, %v579_v14, %v647_v18  ;;  %v632_v27 = vmul.f32 0.2, %v518_v20 }
 0x170   : > { %vm616_vm12 = vcmp.gt.f32.partialorder %v582_v22, 0.0  ;;  %v648_v28 = vmul.f32 0.2, %v582_v22  ;;  %vm613_vm13 = vcmp.gt.f32.partialorder %v571_v19, 0.0  ;;  %vm598_vm14 = vcmp.gt.f32.partialorder %v510_v23, 0.0 }
 0x171   : > { %v630_v29 = vmul.f32 0.2, %v510_v23  ;;  %v574_v30 = vadd.f32 %v1712_v24, %v573_v10  ;;  %v661_v31 = vsel %vm597_vm10, %v507_v17, %v629_v21  ;;  %v645_v32 = vmul.f32 0.2, %v571_v19 }
 0x172   : > { %v664_v33 = vsel %vm600_vm11, %v518_v20, %v632_v27  ;;  %v680_v34 = vsel %vm616_vm12, %v582_v22, %v648_v28 }
 0x173   : > { %v1100_v35 = vpack.c.bf16 %v664_v33, %v663_v25  ;;  %v1140_v36 = vpack.c.bf16 %v680_v34, %v679_v26  ;;  %v662_v37 = vsel %vm598_vm14, %v510_v23, %v630_v29  ;;  %vm614_vm15 = vcmp.gt.f32.partialorder %v574_v30, 0.0 }
 0x174   : > { %v1095_v38 = vpack.c.bf16 %v662_v37, %v661_v31  ;;  %v646_v39 = vmul.f32 0.2, %v574_v30  ;;  %v677_v24 = vsel %vm613_vm13, %v571_v19, %v645_v32 }
 0x175   : > { %1148 = vst [vmem:[%s1728_s24 + $0x38] sm:$0xff] %v1100_v35   ;;  %1156 = vst [vmem:[%s1728_s24 + $0x78] sm:$0xff] %v1140_v36  }
 0x176   : > { %1147 = vst [vmem:[%s1728_s24 + $0x30] sm:$0xff] %v1095_v38   ;;  %v678_v40 = vsel %vm614_vm15, %v574_v30, %v646_v39 }
 0x177   : > { %v1135_v41 = vpack.c.bf16 %v678_v40, %v677_v24 }
 0x179   : > { %1155 = vst [vmem:[%s1728_s24 + $0x70] sm:$0xff] %v1135_v41  }
 0x17a   : > { %1417 = shalt.err (!%p1414_p5)
}
 0x17b   : > { %s1418_s6 = scalar_lea.hbm %s1776_s25, 2048  ;;  %s1422_s19 = scalar_lea.hbm %s1831_s3, 4096 }
 0x17c   : > { %p1419_p9 = scmp.ne.s32.totalorder %s1776_s25, %s1418_s6  ;;  %p1423_p3 = scmp.lt.u32.totalorder %s1776_s25, %s1831_s3 }
 0x17d   : > { %p1424_p7 = scmp.lt.u32.totalorder %s1422_s19, %s1418_s6  ;;  %p1426_p4 = scmp.lt.u32.totalorder %s1418_s6, %s1776_s25 }
 0x17e   : > { %p1420_p1 = pnand %p1419_p9, %p1618_p10 }
 0x17f   : > { %p1425_p13 = por %p1424_p7, %p1423_p3 }
 0x180   : > { %p1421_p2 = pneg %p1420_p1 }
 0x181   : > { %p1427_p6 = por %p1426_p4, %p1425_p13 }
 0x183   : > { %p1428_p8 = pnand %p1427_p6, %p1421_p2 }
 0x185   : > { %1431 = shalt.err (!%p1428_p8)
}
 0x186   : > { %s1497_s24 = smov 64   ;;  %s1498_s10 = smov 4  }
 0x187   : > { %1251 = dma.vmem_to_hbm [thread:$0]  (%p1618_p10), %s1778_s11, 2048, %s1776_s25, %s842_s15, %s1497_s24, %s1497_s24, %s1498_s10  }
 0x188 PF: > { %s872_s9 = sand.u32 1, %s1470_s12   ;;  %p1849_p12 = scmp.ne.s32.totalorder %s1839_s23, 0 }
 0x189   : > { %p1850_p11 = scmp.ge.s32.totalorder %s1490_s17, 2  ;;  %s873_s18 = scalar_lea.sflag [#allocation4], %s872_s9 }
 0x18b   : > { %p1262_p0 = pnand %p1850_p11, %p1849_p12 }
 0x18d   : > { %1465 = dma.done.wait (!%p1262_p0), %s873_s18, 2048  }
 0x18e   : > { %1467 = vsyncadd (!%p1262_p0), %s873_s18, 4294965248  ;;  %s20_s17 = sadd.s32 1, %s1490_s17   ;;  %s1851_s12 = smov %s1474_s13 }
 0x18f   : > { %p17_p5 = scmp.ge.s32.totalorder %s20_s17, 4   ;;  %s1852_s13 = smov %s1478_s14 }
 0x190   : > { %s1853_s14 = smov %s1627_s5  ;;  %s1854_s15 = smov %s1486_s16 }
 0x191   : > { %s1855_s16 = smov %s1857_s28  ;;  %19 = sbr.rel (!%p17_p5) target bundleno = 7 (0x7), region = 81 }
 0x198   :  { %878 = vsyncpa [#allocation3], 1 }
 0x199   :  { %880 = vsyncpa [#allocation3 + $0x1], 1 }
 0x19a   :  { %881 = vsyncpa [#allocation6], 1 }
 0x19b   :  { %882 = vsyncpa [#allocation4], 1 }
 0x19c   :  { %884 = vsyncpa [#allocation4 + $0x1], 1 }

// kernel: tpu_custom_call.1
= control target key start
LH: loop header
LB: loop body
LE: loop exit
PB: predicated region body
PF: predicated region fallthrough
CT: control target
= control target key end

     0   :  { %8 = vsyncpa [#allocation3], 0  ;;  %s1828_s0 = inlined_call_operand.hbm [shape: bf16[2,256,128], index: 0, kind: input, shape index: {}]   ;;  %s1829_s1 = inlined_call_operand.hbm [shape: bf16[128,128], index: 1, kind: input, shape index: {}]   ;;  %s1830_s2 = inlined_call_operand.vmem [shape: f32[1,128], index: 2, kind: input, shape index: {}]   ;;  %s1831_s3 = inlined_call_operand.hbm [shape: bf16[2,256,128], index: 3, kind: output, shape index: {}]  }
   0x1   :  { %10 = vsyncpa [#allocation3 + $0x1], 0 }
   0x2   :  { %11 = vsyncpa [#allocation6], 0 }
   0x3   :  { %12 = vsyncpa [#allocation4], 0 }
   0x4   :  { %14 = vsyncpa [#allocation4 + $0x1], 0  ;;  %s1519_s12 = smov 0   ;;  %s1521_s13 = smov 0  }
   0x5   :  { %s1523_s14 = smov 0   ;;  %s1525_s15 = smov 0  }
   0x6   :  { %s1527_s16 = smov 0   ;;  %s1529_s17 = smov 0  }
   0x7 LB: > { %s954_s18 = sadd.s32 4294967295, %s1490_s17   ;;  %s955_s19 = sadd.s32 4294967294, %s1490_s17   ;;  %s1490_s17 = sphi %s1529_s17, %s20_s17   ;;  %s1486_s16 = sphi %s1527_s16, %s1855_s16   ;;  %s1482_s15 = sphi %s1525_s15, %s1854_s15   ;;  %s1478_s14 = sphi %s1523_s14, %s1853_s14   ;;  %s1474_s13 = sphi %s1521_s13, %s1852_s13   ;;  %s1470_s12 = sphi %s1519_s12, %s1851_s12  }
   0x8   : > { %p54_p0 = scmp.ne.s32.totalorder %s1474_s13, %s1470_s12  ;;  %p1553_p1 = scmp.eq.s32.totalorder %s954_s18, 0 }
   0x9   : > { %p1557_p2 = scmp.eq.s32.totalorder %s954_s18, 1  ;;  %p128_p3 = scmp.eq.s32.totalorder %s955_s19, 1 }
   0xa   : > { %s1836_s20 = scalar_select %p1553_p1, 1, 0 }
   0xb   : > { %s1837_s21 = scalar_select %p1557_p2, 1, 0 }
   0xc   : > { %p1563_p4 = por %p1553_p1, %p54_p0  ;;  %p956_p5 = scmp.ge.s32.totalorder %s1490_s17, 1 }
   0xd   : > { %p1568_p6 = por %p128_p3, %p54_p0  ;;  %p135_p7 = scmp.lt.s32.totalorder %s1490_s17, 3 }
   0xe   : > { %s1838_s22 = scalar_select %p1563_p4, 1, 0 }
   0xf   : > { %s1839_s23 = scalar_select %p1568_p6, 1, 0 }
  0x10   : > { %p1573_p8 = pnand %p956_p5, %p135_p7  ;;  %s1492_s25 = smov [#allocation5]  }
  0x11   : > { %s147_s26 = sshll.u32 %s1492_s25, 4  ;;  %s32_s28 = sadd.s32 1, %s1486_s16  ;;  %s148_s26 = int_to_ptr.vmem [resolvable:$true] %s147_s26 }
  0x12   : > { %s1840_s24 = scalar_select %p1573_p8, 1, 0 }
  0x13   : > { %p1253_p9 = pneg %p1573_p8  ;;  %s1346_s4 = scalar_lea.hbm %s1829_s1, 1024 }
  0x14   : > { %p1347_p12 = scmp.ne.s32.totalorder %s1829_s1, %s1346_s4  ;;  %p1353_p5 = scmp.lt.u32.totalorder %s1346_s4, %s1829_s1 }
  0x15   : > { %p1582_p11 = pnand %p1253_p9, %p1553_p1 }
  0x17   : > { %p1348_p13 = pneg %p1582_p11 }
  0x19   : > { %p1349_p0 = pnand %p1348_p13, %p1347_p12 }
  0x1b   : > { %p1350_p3 = pneg %p1349_p0 }
  0x1d   : > { %p1355_p7 = pnand %p1353_p5, %p1350_p3 }
  0x1f   : > { %1358 = shalt.err (!%p1355_p7)
}
  0x20   : > { %s1359_s9 = scalar_lea.vmem %s148_s26, 1024  ;;  %p1367_p1 = scmp.lt.s32.totalorder %s148_s26, %s148_s26 }
  0x21   : > { %p1360_p9 = scmp.ne.s32.totalorder %s148_s26, %s1359_s9  ;;  %p1368_p4 = scmp.lt.s32.totalorder %s1359_s9, %s1359_s9 }
  0x23   : > { %p1362_p10 = pnand %p1360_p9, %p1348_p13  ;;  %p1369_p8 = por %p1368_p4, %p1367_p1 }
  0x25   : > { %p1363_p6 = pneg %p1362_p10 }
  0x27   : > { %p1370_p2 = pnand %p1369_p8, %p1363_p6 }
  0x29   : > { %1373 = shalt.err (!%p1370_p2)
}
  0x2a   : > { %s1493_s10 = smov 64   ;;  %s1494_s11 = smov 4  }
  0x2b   : > { %1256 = dma.hbm_to_vmem [thread:$0]  (!%p1582_p11), %s1829_s1, 1024, %s148_s26, [#allocation6], %s1493_s10, %s1493_s10, %s1494_s11  }
  0x2c   : > { %p34_p1 = scmp.ge.s32.totalorder %s32_s28, 2  ;;  %s41_s25 = sadd.s32 1, %s1478_s14 }
  0x2d   : > { %p48_p2 = scmp.ne.s32.totalorder %s1478_s14, %s1474_s13  ;;  %p49_p4 = scmp.eq.s32.totalorder %s1490_s17, 0 }
  0x2e   : > { %s1857_s28 = smov (%p34_p1, %s32_s28), 0  ;;  %p1843_p8 = scmp.ne.s32.totalorder %s1837_s21, 0 }
  0x2f   : > { %p1612_p6 = por %p49_p4, %p48_p2  ;;  %s36_s30 = ssub.s32 %s1486_s16, %s1857_s28 }
  0x30   : > { %p1618_p10 = por %p1843_p8, %p48_p2  ;;  %p1266_p12 = scmp.lt.s32.totalorder %s1490_s17, 2 }
  0x31   : > { %p39_p11 = scmp.eq.s32.totalorder %s36_s30, 0  ;;  %s164_s26 = sand.u32 1, %s1478_s14  }
  0x32   : > { %s959_s4 = sshll.u32 %s164_s26, 7  ;;  %s1028_s6 = sshll.u32 %s1486_s16, 11 }
  0x33   : > { %s1627_s5 = scalar_select %p39_p11, %s1478_s14, %s41_s25  }
  0x34   : > { %s1633_s9 = scalar_lea.hbm %s1828_s0, %s1028_s6  ;;  %s168_s21 = scalar_lea.vmem [#allocation2], %s959_s4 }
  0x35   : > { %s177_s18 = sshll.u32 %s168_s21, 4  ;;  %p1639_p13 = pnand %p1266_p12, %p1612_p6  ;;  %s1635_s18 = int_to_ptr.vmem [resolvable:$true] %s177_s18 }
  0x36   : > { %s1643_s25 = scalar_lea.sflag [#allocation3], %s164_s26  ;;  %s1374_s30 = scalar_lea.hbm %s1633_s9, 2048 }
  0x37   : > { %p1375_p0 = scmp.ne.s32.totalorder %s1633_s9, %s1374_s30  ;;  %p1376_p3 = pneg %p1639_p13 }
  0x38   : > { %s1379_s29 = scalar_lea.hbm %s1828_s0, 4096  ;;  %p1380_p9 = scmp.lt.u32.totalorder %s1633_s9, %s1828_s0 }
  0x39   : > { %p1377_p5 = pnand %p1376_p3, %p1375_p0  ;;  %p1381_p1 = scmp.lt.u32.totalorder %s1379_s29, %s1374_s30 }
  0x3a   : > { %p1383_p4 = scmp.lt.u32.totalorder %s1374_s30, %s1633_s9 }
  0x3b   : > { %p1378_p7 = pneg %p1377_p5  ;;  %p1382_p2 = por %p1381_p1, %p1380_p9 }
  0x3d   : > { %p1384_p6 = por %p1383_p4, %p1382_p2 }
  0x3f   : > { %p1385_p8 = pnand %p1384_p6, %p1378_p7 }
  0x41   : > { %1388 = shalt.err (!%p1385_p8)
}
  0x42   : > { %s1389_s26 = scalar_lea.vmem %s1635_s18, 2048  ;;  %s1495_s21 = smov [#allocation2]  }
  0x43   : > { %p1390_p12 = scmp.ne.s32.totalorder %s1635_s18, %s1389_s26  ;;  %s1394_s4 = sshll.u32 %s1495_s21, 4  ;;  %s1395_s4 = int_to_ptr.vmem [resolvable:$false] %s1394_s4 }
  0x44   : > { %s1396_s6 = scalar_lea.vmem %s1395_s4, 4096  ;;  %p1397_p5 = scmp.lt.s32.totalorder %s1635_s18, %s1395_s4 }
  0x45   : > { %p1392_p11 = pnand %p1390_p12, %p1376_p3  ;;  %p1398_p9 = scmp.lt.s32.totalorder %s1396_s6, %s1389_s26 }
  0x47   : > { %p1393_p0 = pneg %p1392_p11  ;;  %p1399_p1 = por %p1398_p9, %p1397_p5 }
  0x49   : > { %p1400_p2 = pnand %p1399_p1, %p1393_p0 }
  0x4b   : > { %1403 = shalt.err (!%p1400_p2)
}
  0x4c   : > { %1260 = dma.hbm_to_vmem [thread:$0]  (!%p1639_p13), %s1633_s9, 2048, %s1635_s18, %s1643_s25, %s1493_s10, %s1493_s10, %s1494_s11  }
  0x4d   : > { %p1846_p3 = scmp.ne.s32.totalorder %s1840_s24, 0 }
  0x4e   : > { %s1677_s30 = sand.u32 (!%p1846_p3), 1, %s1474_s13   ;;  %p1847_p7 = scmp.ne.s32.totalorder (!%p1846_p3), %s1838_s22, 0 }
  0x4f   : > { %189 = sbr.rel (%p1846_p3) target bundleno = 392 (0x188), region = 32  ;;  %s963_s29 = sshll.u32 (!%p1846_p3), %s1677_s30, 7 }
  0x50   : > { %s192_s7 = scalar_lea.sflag (!%p1846_p3), [#allocation3], %s1677_s30  ;;  %s1683_s19 = scalar_lea.vmem (!%p1846_p3), [#allocation2], %s963_s29 }
  0x56   : > { %1457 = dma.done.wait (%p1847_p7), %s192_s7, 2048  }
  0x57   : > { %1459 = vsyncadd (%p1847_p7), %s192_s7, 4294965248  ;;  %p1848_p13 = scmp.ne.s32.totalorder %s1836_s20, 0 }
  0x59   : > { %1461 = dma.done.wait (%p1848_p13), [#allocation6], 1024  }
  0x5a   : > { %1463 = vsyncadd (%p1848_p13), [#allocation6], 4294966272  ;;  %v1322_v0 = vld [vmem:[#allocation5] sm:$0xff]   ;;  %v1323_v1 = vld [vmem:[#allocation5 + $0x8] sm:$0xff]   ;;  %s1728_s24 = scalar_lea.vmem [#allocation7], %s963_s29  ;;  %s1061_s10 = sshll.u32 %s1482_s15, 11 }
  0x5b   : > { %1181 = vmatprep.subr.bf16.mxu0 %v1322_v0  ;;  %1229 = vmatprep.subr.bf16.mxu1 %v1322_v0  ;;  %v1324_v2 = vld [vmem:[#allocation5 + $0x10] sm:$0xff]   ;;  %v1325_v3 = vld [vmem:[#allocation5 + $0x18] sm:$0xff]   ;;  %v1330_v4 = vld [vmem:[%s1683_s19] sm:$0xff]   ;;  %s857_s11 = sshll.u32 %s1728_s24, 4  ;;  %s1776_s25 = scalar_lea.hbm %s1831_s3, %s1061_s10  ;;  %s1778_s11 = int_to_ptr.vmem [resolvable:$true] %s857_s11 }
  0x5c   : > { %1182 = vmatpush3.bf16.msra.mxu0 %v1322_v0  ;;  %1237 = vmatpush3.bf16.msra.mxu1 %v1322_v0  ;;  %v1331_v5 = vld [vmem:[%s1683_s19 + $0x40] sm:$0xff]   ;;  %v1327_v7 = vld [vmem:[#allocation5 + $0x28] sm:$0xff]   ;;  %v1328_v8 = vld [vmem:[#allocation5 + $0x30] sm:$0xff]   ;;  %s842_s15 = scalar_lea.sflag [#allocation4], %s1677_s30  ;;  %s1404_s8 = scalar_lea.vmem %s1778_s11, 2048 }
  0x5d   : > { %1183 = vmatprep.subr.bf16.mxu0 %v1323_v1  ;;  %1230 = vmatprep.subr.bf16.mxu1 %v1323_v1  ;;  %v1326_v6 = vld [vmem:[#allocation5 + $0x20] sm:$0xff]   ;;  %v1329_v9 = vld [vmem:[#allocation5 + $0x38] sm:$0xff]   ;;  %v1332_v10 = vld [vmem:[%s1683_s19 + $0x8] sm:$0xff]   ;;  %p1405_p4 = scmp.ne.s32.totalorder %s1778_s11, %s1404_s8  ;;  %s1496_s26 = smov [#allocation7]  }
  0x5e   : > { %1197 = vmatprep.mubr.bf16.mxu0 %v1330_v4  ;;  %1213 = vmatprep.mubr.bf16.mxu1 %v1331_v5  ;;  %v1333_v11 = vld [vmem:[%s1683_s19 + $0x48] sm:$0xff]   ;;  %v1334_v12 = vld [vmem:[%s1683_s19 + $0x10] sm:$0xff]   ;;  %v1336_v14 = vld [vmem:[%s1683_s19 + $0x18] sm:$0xff]   ;;  %s1408_s21 = sshll.u32 %s1496_s26, 4  ;;  %s1409_s21 = int_to_ptr.vmem [resolvable:$false] %s1408_s21 }
  0x5f   : > { %v1335_v13 = vld [vmem:[%s1683_s19 + $0x50] sm:$0xff]   ;;  %v1337_v15 = vld [vmem:[%s1683_s19 + $0x58] sm:$0xff]   ;;  %v1338_v16 = vld [vmem:[%s1683_s19 + $0x20] sm:$0xff]   ;;  %p1406_p6 = pnand %p1405_p4, %p1618_p10  ;;  %s1410_s4 = scalar_lea.vmem %s1409_s21, 4096 }
  0x60   : > { %1184 = vmatpush3.bf16.msra.mxu0 %v1323_v1  ;;  %1238 = vmatpush3.bf16.msra.mxu1 %v1323_v1  ;;  %v1339_v17 = vld [vmem:[%s1683_s19 + $0x60] sm:$0xff]   ;;  %v1340_v18 = vld [vmem:[%s1683_s19 + $0x28] sm:$0xff]   ;;  %v1342_v20 = vld [vmem:[%s1683_s19 + $0x30] sm:$0xff]   ;;  %p1411_p12 = scmp.lt.s32.totalorder %s1778_s11, %s1409_s21  ;;  %p1412_p11 = scmp.lt.s32.totalorder %s1410_s4, %s1404_s8 }
  0x61   : > { %1185 = vmatprep.subr.bf16.mxu0 %v1324_v2  ;;  %1231 = vmatprep.subr.bf16.mxu1 %v1324_v2  ;;  %v1341_v19 = vld [vmem:[%s1683_s19 + $0x68] sm:$0xff]   ;;  %v1343_v21 = vld [vmem:[%s1683_s19 + $0x70] sm:$0xff]   ;;  %v1344_v22 = vld [vmem:[%s1683_s19 + $0x38] sm:$0xff]   ;;  %p1407_p8 = pneg %p1406_p6 }
  0x62   : > { %v1345_v23 = vld [vmem:[%s1683_s19 + $0x78] sm:$0xff]   ;;  %v1712_v24 = vld [vmem:[%s1830_s2] ss:$0 sm:$0xff]  ;;  %p1413_p0 = por %p1412_p11, %p1411_p12 }
  0x64   : > { %1186 = vmatpush3.bf16.msra.mxu0 %v1324_v2  ;;  %1239 = vmatpush3.bf16.msra.mxu1 %v1324_v2  ;;  %p1414_p5 = pnand %p1413_p0, %p1407_p8 }
  0x65   : > { %1187 = vmatprep.subr.bf16.mxu0 %v1325_v3  ;;  %1232 = vmatprep.subr.bf16.mxu1 %v1325_v3 }
  0x68   : > { %1188 = vmatpush3.bf16.msra.mxu0 %v1325_v3  ;;  %1240 = vmatpush3.bf16.msra.mxu1 %v1325_v3 }
  0x69   : > { %1189 = vmatprep.subr.bf16.mxu0 %v1326_v6  ;;  %1233 = vmatprep.subr.bf16.mxu1 %v1326_v6 }
  0x6c   : > { %1190 = vmatpush3.bf16.msra.mxu0 %v1326_v6  ;;  %1241 = vmatpush3.bf16.msra.mxu1 %v1326_v6 }
  0x6d   : > { %1191 = vmatprep.subr.bf16.mxu0 %v1327_v7  ;;  %1234 = vmatprep.subr.bf16.mxu1 %v1327_v7 }
  0x70   : > { %1192 = vmatpush3.bf16.msra.mxu0 %v1327_v7  ;;  %1242 = vmatpush3.bf16.msra.mxu1 %v1327_v7 }
  0x71   : > { %1193 = vmatprep.subr.bf16.mxu0 %v1328_v8  ;;  %1235 = vmatprep.subr.bf16.mxu1 %v1328_v8 }
  0x74   : > { %1194 = vmatpush3.bf16.msra.mxu0 %v1328_v8  ;;  %1243 = vmatpush3.bf16.msra.mxu1 %v1328_v8 }
  0x75   : > { %1195 = vmatprep.subr.bf16.mxu0 %v1329_v9  ;;  %1236 = vmatprep.subr.bf16.mxu1 %v1329_v9 }
  0x78   : > { %1196 = vmatpush3.bf16.msra.mxu0 %v1329_v9  ;;  %1244 = vmatpush3.bf16.msra.mxu1 %v1329_v9 }
  0x7b   : > { %1198 = vmatmul.mubr.bf16.vlgmr.msra.gmra.mrb[0].mxu0 %v1332_v10  ;;  %1214 = vmatmul.mubr.bf16.vlgmr.msra.gmra.mrb[0].mxu1 %v1333_v11 }
  0x7c   : > { %1201 = vmatprep.mubr.bf16.mxu0 %v1334_v12  ;;  %1217 = vmatprep.mubr.bf16.mxu1 %v1335_v13 }
  0x83   : > { %1202 = vmatmul.mubr.bf16.gmra.mrb[4].mxu0 %v1336_v14  ;;  %1218 = vmatmul.mubr.bf16.gmra.mrb[4].mxu1 %v1337_v15 }
  0x84   : > { %1205 = vmatprep.mubr.bf16.mxu0 %v1338_v16  ;;  %1221 = vmatprep.mubr.bf16.mxu1 %v1339_v17 }
  0x8b   : > { %1206 = vmatmul.mubr.bf16.gmra.mrb[8].mxu0 %v1340_v18  ;;  %1222 = vmatmul.mubr.bf16.gmra.mrb[8].mxu1 %v1341_v19 }
  0x8c   : > { %1209 = vmatprep.mubr.bf16.mxu0 %v1342_v20  ;;  %1225 = vmatprep.mubr.bf16.mxu1 %v1343_v21 }
  0x93   : > { %1210 = vmatmul.mubr.bf16.gmra.mrb[12].mxu0 %v1344_v22  ;;  %1226 = vmatmul.mubr.bf16.gmra.mrb[12].mxu1 %v1345_v23 }
 0x14e   : > { %v1199_v25 = vpop.f32.mrb[0].mxu0  ;;  %v1215_v26 = vpop.f32.mrb[0].mxu1 }
 0x14f   : > { %v467_v27 = vadd.f32 %v1199_v25, %v1712_v24  ;;  %v531_v28 = vadd.f32 %v1215_v26, %v1712_v24  ;;  %v458_v29 = vpop.f32.mrb[1].mxu0  ;;  %v522_v30 = vpop.f32.mrb[1].mxu1 }
 0x150   : > { %v459_v31 = vadd.f32 %v1712_v24, %v458_v29  ;;  %v523_v32 = vadd.f32 %v1712_v24, %v522_v30  ;;  %v1200_v33 = vpop.f32.mrb[2].mxu0  ;;  %v1216_v34 = vpop.f32.mrb[2].mxu1 }
 0x151   : > { %vm587_vm0 = vcmp.gt.f32.partialorder %v467_v27, 0.0  ;;  %v619_v35 = vmul.f32 0.2, %v467_v27  ;;  %vm603_vm1 = vcmp.gt.f32.partialorder %v531_v28, 0.0  ;;  %v635_v36 = vmul.f32 0.2, %v531_v28 }
 0x152   : > { %vm585_vm2 = vcmp.gt.f32.partialorder %v459_v31, 0.0  ;;  %v617_v37 = vmul.f32 0.2, %v459_v31  ;;  %vm601_vm3 = vcmp.gt.f32.partialorder %v523_v32, 0.0  ;;  %v633_v38 = vmul.f32 0.2, %v523_v32 }
 0x153   : > { %v470_v39 = vadd.f32 %v1200_v33, %v1712_v24  ;;  %v534_v40 = vadd.f32 %v1216_v34, %v1712_v24  ;;  %v461_v41 = vpop.f32.mrb[3].mxu0  ;;  %v525_v42 = vpop.f32.mrb[3].mxu1  ;;  %v651_v43 = vsel %vm587_vm0, %v467_v27, %v619_v35  ;;  %v667_v44 = vsel %vm603_vm1, %v531_v28, %v635_v36 }
 0x154   : > { %v462_v45 = vadd.f32 %v1712_v24, %v461_v41  ;;  %v526_v46 = vadd.f32 %v1712_v24, %v525_v42  ;;  %v649_v51 = vsel %vm585_vm2, %v459_v31, %v617_v37  ;;  %v665_v52 = vsel %vm601_vm3, %v523_v32, %v633_v38 }
 0x155   : > { %vm588_vm4 = vcmp.gt.f32.partialorder %v470_v39, 0.0  ;;  %v620_v47 = vmul.f32 0.2, %v470_v39  ;;  %vm604_vm5 = vcmp.gt.f32.partialorder %v534_v40, 0.0  ;;  %v636_v48 = vmul.f32 0.2, %v534_v40 }
 0x156   : > { %vm586_vm6 = vcmp.gt.f32.partialorder %v462_v45, 0.0  ;;  %v618_v49 = vmul.f32 0.2, %v462_v45  ;;  %vm602_vm7 = vcmp.gt.f32.partialorder %v526_v46, 0.0  ;;  %v634_v50 = vmul.f32 0.2, %v526_v46 }
 0x157   : > { %v652_v53 = vsel %vm588_vm4, %v470_v39, %v620_v47  ;;  %v668_v54 = vsel %vm604_vm5, %v534_v40, %v636_v48  ;;  %v1203_v55 = vpop.f32.mrb[4].mxu0  ;;  %v1219_v56 = vpop.f32.mrb[4].mxu1 }
 0x158   : > { %v1070_v57 = vpack.c.bf16 %v652_v53, %v651_v43  ;;  %v1110_v58 = vpack.c.bf16 %v668_v54, %v667_v44  ;;  %v650_v59 = vsel %vm586_vm6, %v462_v45, %v618_v49  ;;  %v666_v60 = vsel %vm602_vm7, %v526_v46, %v634_v50  ;;  %v474_v61 = vpop.f32.mrb[5].mxu0  ;;  %v538_v62 = vpop.f32.mrb[5].mxu1 }
 0x159   : > { %v1065_v63 = vpack.c.bf16 %v650_v59, %v649_v51  ;;  %v1105_v0 = vpack.c.bf16 %v666_v60, %v665_v52  ;;  %v483_v1 = vadd.f32 %v1203_v55, %v1712_v24  ;;  %v547_v2 = vadd.f32 %v1219_v56, %v1712_v24  ;;  %v1204_v3 = vpop.f32.mrb[6].mxu0  ;;  %v1220_v4 = vpop.f32.mrb[6].mxu1 }
 0x15a   : > { %1142 = vst [vmem:[%s1728_s24 + $0x8] sm:$0xff] %v1070_v57   ;;  %1150 = vst [vmem:[%s1728_s24 + $0x48] sm:$0xff] %v1110_v58   ;;  %v475_v5 = vadd.f32 %v1712_v24, %v474_v61  ;;  %v539_v6 = vadd.f32 %v1712_v24, %v538_v62  ;;  %v486_v7 = vadd.f32 %v1204_v3, %v1712_v24  ;;  %v477_v9 = vpop.f32.mrb[7].mxu0  ;;  %v541_v10 = vpop.f32.mrb[7].mxu1 }
 0x15b   : > { %v550_v8 = vadd.f32 %v1220_v4, %v1712_v24  ;;  %1066 = vst [vmem:[%s1728_s24] sm:$0xff] %v1065_v63   ;;  %1149 = vst [vmem:[%s1728_s24 + $0x40] sm:$0xff] %v1105_v0   ;;  %vm591_vm8 = vcmp.gt.f32.partialorder %v483_v1, 0.0  ;;  %v623_v11 = vmul.f32 0.2, %v483_v1  ;;  %vm607_vm9 = vcmp.gt.f32.partialorder %v547_v2, 0.0 }
 0x15c   : > { %v639_v12 = vmul.f32 0.2, %v547_v2  ;;  %vm589_vm10 = vcmp.gt.f32.partialorder %v475_v5, 0.0  ;;  %v621_v13 = vmul.f32 0.2, %v475_v5  ;;  %vm605_vm11 = vcmp.gt.f32.partialorder %v539_v6, 0.0 }
 0x15d   : > { %v655_v14 = vsel %vm591_vm8, %v483_v1, %v623_v11  ;;  %v637_v15 = vmul.f32 0.2, %v539_v6  ;;  %vm592_vm12 = vcmp.gt.f32.partialorder %v486_v7, 0.0  ;;  %v624_v16 = vmul.f32 0.2, %v486_v7 }
 0x15e   : > { %v671_v17 = vsel %vm607_vm9, %v547_v2, %v639_v12  ;;  %v653_v18 = vsel %vm589_vm10, %v475_v5, %v621_v13  ;;  %vm608_vm13 = vcmp.gt.f32.partialorder %v550_v8, 0.0  ;;  %v640_v19 = vmul.f32 0.2, %v550_v8  ;;  %v1207_v20 = vpop.f32.mrb[8].mxu0  ;;  %v1223_v21 = vpop.f32.mrb[8].mxu1 }
 0x15f   : > { %v656_v22 = vsel %vm592_vm12, %v486_v7, %v624_v16  ;;  %v478_v23 = vadd.f32 %v1712_v24, %v477_v9  ;;  %v542_v25 = vadd.f32 %v1712_v24, %v541_v10  ;;  %v499_v26 = vadd.f32 %v1207_v20, %v1712_v24  ;;  %v490_v27 = vpop.f32.mrb[9].mxu0  ;;  %v554_v28 = vpop.f32.mrb[9].mxu1 }
 0x160   : > { %v1080_v29 = vpack.c.bf16 %v656_v22, %v655_v14  ;;  %v672_v30 = vsel %vm608_vm13, %v550_v8, %v640_v19  ;;  %v563_v31 = vadd.f32 %v1223_v21, %v1712_v24  ;;  %v491_v32 = vadd.f32 %v1712_v24, %v490_v27  ;;  %v1208_v33 = vpop.f32.mrb[10].mxu0  ;;  %v1224_v34 = vpop.f32.mrb[10].mxu1 }
 0x161   : > { %v1120_v35 = vpack.c.bf16 %v672_v30, %v671_v17  ;;  %vm590_vm14 = vcmp.gt.f32.partialorder %v478_v23, 0.0  ;;  %v622_v36 = vmul.f32 0.2, %v478_v23  ;;  %vm606_vm15 = vcmp.gt.f32.partialorder %v542_v25, 0.0  ;;  %v493_v37 = vpop.f32.mrb[11].mxu0  ;;  %v557_v38 = vpop.f32.mrb[11].mxu1 }
 0x162   : > { %1144 = vst [vmem:[%s1728_s24 + $0x18] sm:$0xff] %v1080_v29   ;;  %v638_v39 = vmul.f32 0.2, %v542_v25  ;;  %vm595_vm0 = vcmp.gt.f32.partialorder %v499_v26, 0.0  ;;  %v627_v40 = vmul.f32 0.2, %v499_v26  ;;  %v669_v41 = vsel %vm605_vm11, %v539_v6, %v637_v15 }
 0x163   : > { %vm611_vm1 = vcmp.gt.f32.partialorder %v563_v31, 0.0  ;;  %1152 = vst [vmem:[%s1728_s24 + $0x58] sm:$0xff] %v1120_v35   ;;  %v654_v42 = vsel %vm590_vm14, %v478_v23, %v622_v36  ;;  %v643_v43 = vmul.f32 0.2, %v563_v31  ;;  %vm593_vm2 = vcmp.gt.f32.partialorder %v491_v32, 0.0 }
 0x164   : > { %v1075_v44 = vpack.c.bf16 %v654_v42, %v653_v18  ;;  %v670_v45 = vsel %vm606_vm15, %v542_v25, %v638_v39  ;;  %v625_v46 = vmul.f32 0.2, %v491_v32  ;;  %v555_v47 = vadd.f32 %v1712_v24, %v554_v28 }
 0x165   : > { %v1115_v48 = vpack.c.bf16 %v670_v45, %v669_v41  ;;  %v659_v49 = vsel %vm595_vm0, %v499_v26, %v627_v40  ;;  %v675_v50 = vsel %vm611_vm1, %v563_v31, %v643_v43  ;;  %v502_v51 = vadd.f32 %v1208_v33, %v1712_v24 }
 0x166   : > { %1143 = vst [vmem:[%s1728_s24 + $0x10] sm:$0xff] %v1075_v44   ;;  %vm609_vm3 = vcmp.gt.f32.partialorder %v555_v47, 0.0  ;;  %v641_v52 = vmul.f32 0.2, %v555_v47  ;;  %v566_v53 = vadd.f32 %v1224_v34, %v1712_v24  ;;  %v494_v54 = vadd.f32 %v1712_v24, %v493_v37  ;;  %v1211_v55 = vpop.f32.mrb[12].mxu0  ;;  %v1227_v56 = vpop.f32.mrb[12].mxu1 }
 0x167   : > { %1151 = vst [vmem:[%s1728_s24 + $0x50] sm:$0xff] %v1115_v48   ;;  %vm596_vm4 = vcmp.gt.f32.partialorder %v502_v51, 0.0  ;;  %v628_v57 = vmul.f32 0.2, %v502_v51  ;;  %v558_v58 = vadd.f32 %v1712_v24, %v557_v38  ;;  %v515_v59 = vadd.f32 %v1211_v55, %v1712_v24  ;;  %v506_v60 = vpop.f32.mrb[13].mxu0  ;;  %v570_v61 = vpop.f32.mrb[13].mxu1 }
 0x168   : > { %v657_v62 = vsel %vm593_vm2, %v491_v32, %v625_v46  ;;  %vm612_vm5 = vcmp.gt.f32.partialorder %v566_v53, 0.0  ;;  %v644_v63 = vmul.f32 0.2, %v566_v53  ;;  %vm594_vm6 = vcmp.gt.f32.partialorder %v494_v54, 0.0  ;;  %v1212_v0 = vpop.f32.mrb[14].mxu0  ;;  %v1228_v1 = vpop.f32.mrb[14].mxu1 }
 0x169   : > { %v660_v2 = vsel %vm596_vm4, %v502_v51, %v628_v57  ;;  %v626_v3 = vmul.f32 0.2, %v494_v54  ;;  %vm610_vm7 = vcmp.gt.f32.partialorder %v558_v58, 0.0  ;;  %v642_v4 = vmul.f32 0.2, %v558_v58  ;;  %v509_v5 = vpop.f32.mrb[15].mxu0 }
 0x16a   : > { %v673_v6 = vsel %vm609_vm3, %v555_v47, %v641_v52  ;;  %v1090_v7 = vpack.c.bf16 %v660_v2, %v659_v49  ;;  %v676_v8 = vsel %vm612_vm5, %v566_v53, %v644_v63  ;;  %v631_v9 = vmul.f32 0.2, %v515_v59  ;;  %v573_v10 = vpop.f32.mrb[15].mxu1 }
 0x16b   : > { %v1130_v11 = vpack.c.bf16 %v676_v8, %v675_v50  ;;  %v658_v12 = vsel %vm594_vm6, %v494_v54, %v626_v3  ;;  %v674_v13 = vsel %vm610_vm7, %v558_v58, %v642_v4  ;;  %v579_v14 = vadd.f32 %v1227_v56, %v1712_v24 }
 0x16c   : > { %1146 = vst [vmem:[%s1728_s24 + $0x28] sm:$0xff] %v1090_v7   ;;  %v1085_v15 = vpack.c.bf16 %v658_v12, %v657_v62  ;;  %v1125_v16 = vpack.c.bf16 %v674_v13, %v673_v6  ;;  %vm599_vm8 = vcmp.gt.f32.partialorder %v515_v59, 0.0  ;;  %v507_v17 = vadd.f32 %v1712_v24, %v506_v60 }
 0x16d   : > { %1154 = vst [vmem:[%s1728_s24 + $0x68] sm:$0xff] %v1130_v11   ;;  %vm615_vm9 = vcmp.gt.f32.partialorder %v579_v14, 0.0  ;;  %v647_v18 = vmul.f32 0.2, %v579_v14  ;;  %v571_v19 = vadd.f32 %v1712_v24, %v570_v61  ;;  %v518_v20 = vadd.f32 %v1212_v0, %v1712_v24 }
 0x16e   : > { %1145 = vst [vmem:[%s1728_s24 + $0x20] sm:$0xff] %v1085_v15   ;;  %1153 = vst [vmem:[%s1728_s24 + $0x60] sm:$0xff] %v1125_v16   ;;  %v629_v21 = vmul.f32 0.2, %v507_v17  ;;  %v582_v22 = vadd.f32 %v1228_v1, %v1712_v24  ;;  %v510_v23 = vadd.f32 %v1712_v24, %v509_v5  ;;  %v663_v25 = vsel %vm599_vm8, %v515_v59, %v631_v9 }
 0x16f   : > { %vm597_vm10 = vcmp.gt.f32.partialorder %v507_v17, 0.0  ;;  %vm600_vm11 = vcmp.gt.f32.partialorder %v518_v20, 0.0  ;;  %v679_v26 = vsel %vm615_vm9, %v579_v14, %v647_v18  ;;  %v632_v27 = vmul.f32 0.2, %v518_v20 }
 0x170   : > { %vm616_vm12 = vcmp.gt.f32.partialorder %v582_v22, 0.0  ;;  %v648_v28 = vmul.f32 0.2, %v582_v22  ;;  %vm613_vm13 = vcmp.gt.f32.partialorder %v571_v19, 0.0  ;;  %vm598_vm14 = vcmp.gt.f32.partialorder %v510_v23, 0.0 }
 0x171   : > { %v630_v29 = vmul.f32 0.2, %v510_v23  ;;  %v574_v30 = vadd.f32 %v1712_v24, %v573_v10  ;;  %v661_v31 = vsel %vm597_vm10, %v507_v17, %v629_v21  ;;  %v645_v32 = vmul.f32 0.2, %v571_v19 }
 0x172   : > { %v664_v33 = vsel %vm600_vm11, %v518_v20, %v632_v27  ;;  %v680_v34 = vsel %vm616_vm12, %v582_v22, %v648_v28 }
 0x173   : > { %v1100_v35 = vpack.c.bf16 %v664_v33, %v663_v25  ;;  %v1140_v36 = vpack.c.bf16 %v680_v34, %v679_v26  ;;  %v662_v37 = vsel %vm598_vm14, %v510_v23, %v630_v29  ;;  %vm614_vm15 = vcmp.gt.f32.partialorder %v574_v30, 0.0 }
 0x174   : > { %v1095_v38 = vpack.c.bf16 %v662_v37, %v661_v31  ;;  %v646_v39 = vmul.f32 0.2, %v574_v30  ;;  %v677_v24 = vsel %vm613_vm13, %v571_v19, %v645_v32 }
 0x175   : > { %1148 = vst [vmem:[%s1728_s24 + $0x38] sm:$0xff] %v1100_v35   ;;  %1156 = vst [vmem:[%s1728_s24 + $0x78] sm:$0xff] %v1140_v36  }
 0x176   : > { %1147 = vst [vmem:[%s1728_s24 + $0x30] sm:$0xff] %v1095_v38   ;;  %v678_v40 = vsel %vm614_vm15, %v574_v30, %v646_v39 }
 0x177   : > { %v1135_v41 = vpack.c.bf16 %v678_v40, %v677_v24 }
 0x179   : > { %1155 = vst [vmem:[%s1728_s24 + $0x70] sm:$0xff] %v1135_v41  }
 0x17a   : > { %1417 = shalt.err (!%p1414_p5)
}
 0x17b   : > { %s1418_s6 = scalar_lea.hbm %s1776_s25, 2048  ;;  %s1422_s19 = scalar_lea.hbm %s1831_s3, 4096 }
 0x17c   : > { %p1419_p9 = scmp.ne.s32.totalorder %s1776_s25, %s1418_s6  ;;  %p1423_p3 = scmp.lt.u32.totalorder %s1776_s25, %s1831_s3 }
 0x17d   : > { %p1424_p7 = scmp.lt.u32.totalorder %s1422_s19, %s1418_s6  ;;  %p1426_p4 = scmp.lt.u32.totalorder %s1418_s6, %s1776_s25 }
 0x17e   : > { %p1420_p1 = pnand %p1419_p9, %p1618_p10 }
 0x17f   : > { %p1425_p13 = por %p1424_p7, %p1423_p3 }
 0x180   : > { %p1421_p2 = pneg %p1420_p1 }
 0x181   : > { %p1427_p6 = por %p1426_p4, %p1425_p13 }
 0x183   : > { %p1428_p8 = pnand %p1427_p6, %p1421_p2 }
 0x185   : > { %1431 = shalt.err (!%p1428_p8)
}
 0x186   : > { %s1497_s24 = smov 64   ;;  %s1498_s10 = smov 4  }
 0x187   : > { %1251 = dma.vmem_to_hbm [thread:$0]  (%p1618_p10), %s1778_s11, 2048, %s1776_s25, %s842_s15, %s1497_s24, %s1497_s24, %s1498_s10  }
 0x188 PF: > { %s872_s9 = sand.u32 1, %s1470_s12   ;;  %p1849_p12 = scmp.ne.s32.totalorder %s1839_s23, 0 }
 0x189   : > { %p1850_p11 = scmp.ge.s32.totalorder %s1490_s17, 2  ;;  %s873_s18 = scalar_lea.sflag [#allocation4], %s872_s9 }
 0x18b   : > { %p1262_p0 = pnand %p1850_p11, %p1849_p12 }
 0x18d   : > { %1465 = dma.done.wait (!%p1262_p0), %s873_s18, 2048  }
 0x18e   : > { %1467 = vsyncadd (!%p1262_p0), %s873_s18, 4294965248  ;;  %s20_s17 = sadd.s32 1, %s1490_s17   ;;  %s1851_s12 = smov %s1474_s13 }
 0x18f   : > { %p17_p5 = scmp.ge.s32.totalorder %s20_s17, 4   ;;  %s1852_s13 = smov %s1478_s14 }
 0x190   : > { %s1853_s14 = smov %s1627_s5  ;;  %s1854_s15 = smov %s1486_s16 }
 0x191   : > { %s1855_s16 = smov %s1857_s28  ;;  %19 = sbr.rel (!%p17_p5) target bundleno = 7 (0x7), region = 81 }
 0x198   :  { %878 = vsyncpa [#allocation3], 1 }
 0x199   :  { %880 = vsyncpa [#allocation3 + $0x1], 1 }
 0x19a   :  { %881 = vsyncpa [#allocation6], 1 }
 0x19b   :  { %882 = vsyncpa [#allocation4], 1 }
 0x19c   :  { %884 = vsyncpa [#allocation4 + $0x1], 1 }

</bundles_post_ra>
